<compile_context>
chip_gen: v7x
topology: tpu7x:2x2x1
jax: 0.10.0
libtpu: 0.0.40
codegen_flags: <defaults>
</compile_context>

<pallas_src>
import functools

import jax
import jax.numpy as jnp
from jax.experimental import pallas as pl
from jax.experimental.pallas import tpu as pltpu

LANE = 128


def _silu(x):
    return x * jax.nn.sigmoid(x)


def _net3d_kernel(
    src_col_ref, dst_col_ref, dst_row_ref, feat_ref, feat_bf_ref, d_ref,
    w1_ref, b1_ref, w2_ref, b2_ref, ws_ref, bs_ref,
    u1_ref, c1_ref, u2_ref, c2_ref, bn_scale_ref, bn_shift_ref,
    d_out_ref, feat_out_ref,
    msum_ref,
):
    k = pl.program_id(0)

    @pl.when(k == 0)
    def _():
        msum_ref[...] = jnp.zeros_like(msum_ref)

    feat_bf = feat_bf_ref[...]                 # [N, Hp] bf16, pre-cast in the wrapper
    d = d_ref[...]                             # [TE, Dp] f32 (this edge tile)
    te = d.shape[0]
    n = feat_bf.shape[0]

    # --- gather endpoint features: exact 0/1 one-hot (bf16) matmuls on the MXU ---
    lane_nodes = jax.lax.broadcasted_iota(jnp.int32, (te, n), 1)            # [TE, N]
    src_oh = (lane_nodes == src_col_ref[...]).astype(jnp.bfloat16)
    dst_oh = (lane_nodes == dst_col_ref[...]).astype(jnp.bfloat16)
    src_feat = jnp.dot(src_oh, feat_bf, preferred_element_type=jnp.float32)  # [TE, Hp]
    dst_feat = jnp.dot(dst_oh, feat_bf, preferred_element_type=jnp.float32)  # [TE, Hp]

    # --- message network: fused first layer; all three concat pieces are 128-lane
    #     aligned after the wrapper padding, so this is one tile-aligned K=3*Hp dot ---
    msg_in = jnp.concatenate(
        [src_feat.astype(jnp.bfloat16),
         dst_feat.astype(jnp.bfloat16),
         d.astype(jnp.bfloat16)], axis=-1)                                   # [TE, 3*Hp]
    h1 = _silu(
        jnp.dot(msg_in, w1_ref[...], preferred_element_type=jnp.float32) + b1_ref[...]
    )
    message = _silu(
        jnp.dot(h1.astype(jnp.bfloat16), w2_ref[...],
                preferred_element_type=jnp.float32) + b2_ref[...]
    )                                                                        # [TE, Hp] f32

    # edges.data['d'] += message  (written in place via input_output_aliases)
    d_out_ref[...] = d + message

    # --- soft edge gate: lane reduction (VPU/XLU) instead of an N=1 MXU push ---
    edge_w = jax.nn.sigmoid(
        jnp.sum(message * ws_ref[...], axis=-1, keepdims=True) + bs_ref[0]
    )                                                                        # [TE, 1]
    wmsg = message * edge_w

    # --- scatter-add to destination nodes: pre-transposed one-hot [N, TE] ---
    sub_nodes = jax.lax.broadcasted_iota(jnp.int32, (n, te), 0)              # [N, TE]
    dst_oh_t = (sub_nodes == dst_row_ref[...]).astype(jnp.bfloat16)
    msum_ref[...] += jnp.dot(dst_oh_t, wmsg.astype(jnp.bfloat16),
                             preferred_element_type=jnp.float32)             # [N, Hp]

    # --- finalize: update network + residual, only once all edge tiles are summed ---
    @pl.when(k == pl.num_programs(0) - 1)
    def _():
        feat = feat_ref[...]                                  # f32 copy, read once
        u_in = (msum_ref[...] + feat).astype(jnp.bfloat16)
        hu = _silu(
            jnp.dot(u_in, u1_ref[...], preferred_element_type=jnp.float32) + c1_ref[...]
        )
        hu = hu * bn_scale_ref[...] + bn_shift_ref[...]       # folded eval-mode BatchNorm
        out = jnp.dot(hu.astype(jnp.bfloat16), u2_ref[...],
                      preferred_element_type=jnp.float32) + c2_ref[...]
        feat_out_ref[...] = out + feat


def _pad_last(x, target):
    pad = target - x.shape[-1]
    if pad == 0:
        return x
    return jnp.pad(x, [(0, 0)] * (x.ndim - 1) + [(0, pad)])


def _pad_square(w, hp):
    h_in, h_out = w.shape
    out = jnp.zeros((hp, hp), w.dtype)
    return out.at[:h_in, :h_out].set(w)


def _pad_w1(w1, h, de, hp, dp):
    """Pack [2H+De, H] into a block-padded [2Hp+Dp, Hp] so each concat piece is aligned."""
    out = jnp.zeros((2 * hp + dp, hp), w1.dtype)
    out = out.at[0:h, 0:h].set(w1[0:h])
    out = out.at[hp:hp + h, 0:h].set(w1[h:2 * h])
    out = out.at[2 * hp:2 * hp + de, 0:h].set(w1[2 * h:2 * h + de])
    return out


@functools.partial(jax.jit, static_argnames=("e_tile",))
def net3d_layer(params, feat, d, src_idx, dst_idx, *, e_tile=128):
    n, h = feat.shape
    e, de = d.shape
    if de != h:
        raise ValueError("`d += message` requires edge_dim == hidden_dim")

    f32, bf16 = jnp.float32, jnp.bfloat16
    hp = max(LANE, pl.cdiv(h, LANE) * LANE)      # lane-padded hidden dim
    dp = max(LANE, pl.cdiv(de, LANE) * LANE)     # lane-padded edge-feature dim

    # --- pad the edge count to a multiple of the tile.  Padded edges get an
    # out-of-range endpoint (= n): zero gather one-hot, zero scatter contribution;
    # their d_out rows are sliced away below. ---
    e_pad = pl.cdiv(e, e_tile) * e_tile
    pad_e = e_pad - e
    src_p = jnp.concatenate([src_idx.astype(jnp.int32), jnp.full((pad_e,), n, jnp.int32)])
    dst_p = jnp.concatenate([dst_idx.astype(jnp.int32), jnp.full((pad_e,), n, jnp.int32)])
    src_col = src_p.reshape(e_pad, 1)            # for the [TE, N] gather one-hots
    dst_col = dst_p.reshape(e_pad, 1)
    dst_row = dst_p.reshape(1, e_pad)            # for the transposed [N, TE] scatter one-hot

    # --- lane-pad features / edge features; hoist the bf16 cast of feat out of the loop ---
    feat_f = _pad_last(feat.astype(f32), hp)                              # [N, Hp] f32
    feat_bf = feat_f.astype(bf16)                                         # [N, Hp] bf16
    d_p = jnp.zeros((e_pad, dp), f32).at[:e, :de].set(d.astype(f32))      # [E_pad, Dp]

    # --- lane-pad parameters (zero padding keeps padded lanes exactly zero end-to-end) ---
    w1 = _pad_w1(params["w1"], h, de, hp, dp).astype(bf16)                # [2Hp+Dp, Hp]
    w2 = _pad_square(params["w2"], hp).astype(bf16)
    u1 = _pad_square(params["u1"], hp).astype(bf16)
    u2 = _pad_square(params["u2"], hp).astype(bf16)
    b1 = _pad_last(params["b1"], hp)
    b2 = _pad_last(params["b2"], hp)
    c1 = _pad_last(params["c1"], hp)
    c2 = _pad_last(params["c2"], hp)
    ws = _pad_last(params["ws"], hp)
    # Fold eval-mode BatchNorm into a single scale/shift FMA (then zero-pad lanes).
    bn_scale = _pad_last(params["bn_g"] * jax.lax.rsqrt(params["bn_v"] + 1e-5), hp)
    bn_shift = _pad_last(params["bn_b"] - params["bn_m"]
                         * (params["bn_g"] * jax.lax.rsqrt(params["bn_v"] + 1e-5)), hp)

    grid = (e_pad // e_tile,)
    tile_rows = lambda k: (k, 0)
    whole = lambda k: (0, 0)

    grid_spec = pltpu.PrefetchScalarGridSpec(
        num_scalar_prefetch=0,
        grid=grid,
        in_specs=[
            pl.BlockSpec((e_tile, 1), tile_rows),               # src_col
            pl.BlockSpec((e_tile, 1), tile_rows),               # dst_col
            pl.BlockSpec((1, e_tile), lambda k: (0, k)),        # dst_row (transposed layout)
            pl.BlockSpec((n, hp), whole),                       # feat f32 (resident)
            pl.BlockSpec((n, hp), whole),                       # feat bf16 (resident, pre-cast)
            pl.BlockSpec((e_tile, dp), tile_rows),              # d tile
            pl.BlockSpec((2 * hp + dp, hp), whole),             # w1 (bf16, packed, lane-padded)
            pl.BlockSpec((1, hp), whole),                       # b1
            pl.BlockSpec((hp, hp), whole),                      # w2 (bf16)
            pl.BlockSpec((1, hp), whole),                       # b2
            pl.BlockSpec((1, hp), whole),                       # ws row
            pl.BlockSpec(memory_space=pltpu.MemorySpace.SMEM),  # bs scalar in SMEM
            pl.BlockSpec((hp, hp), whole),                      # u1 (bf16)
            pl.BlockSpec((1, hp), whole),                       # c1
            pl.BlockSpec((hp, hp), whole),                      # u2 (bf16)
            pl.BlockSpec((1, hp), whole),                       # c2
            pl.BlockSpec((1, hp), whole),                       # folded BN scale
            pl.BlockSpec((1, hp), whole),                       # folded BN shift
        ],
        out_specs=[
            pl.BlockSpec((e_tile, dp), tile_rows),              # d_out (aliased to d_p)
            pl.BlockSpec((n, hp), whole),                       # feat_out (written at last step)
        ],
        scratch_shapes=[pltpu.VMEM((n, hp), jnp.float32)],      # m_sum accumulator
    )

    d_new_p, feat_new_p = pl.pallas_call(
        _net3d_kernel,
        out_shape=(
            jax.ShapeDtypeStruct((e_pad, dp), jnp.float32),
            jax.ShapeDtypeStruct((n, hp), jnp.float32),
        ),
        grid_spec=grid_spec,
        input_output_aliases={5: 0},   # padded d -> d_out : in-place edge update
        compiler_params=pltpu.CompilerParams(
            dimension_semantics=("arbitrary",),      # m_sum accumulates across edge tiles
            vmem_limit_bytes=48 * 1024 * 1024,       # safe on v5e/v6e (128 MiB) and v7x (64 MiB)
        ),
    )(
        src_col, dst_col, dst_row, feat_f, feat_bf, d_p,
        w1, b1, w2, b2, ws, params["bs"],
        u1, c1, u2, c2, bn_scale, bn_shift,
    )
    return feat_new_p[:, :h], d_new_p[:e, :de]


def net3d_layer_ref(params, feat, d, src_idx, dst_idx):
    """Pure-JAX f32 reference (independent gather / segment_sum path, no padding)."""
    n = feat.shape[0]
    src_feat = jnp.take(feat, src_idx, axis=0)
    dst_feat = jnp.take(feat, dst_idx, axis=0)
    x = jnp.concatenate([src_feat, dst_feat, d], axis=-1)
    h1 = _silu(x @ params["w1"] + params["b1"])
    message = _silu(h1 @ params["w2"] + params["b2"])
    d_new = d + message
    edge_w = jax.nn.sigmoid(message @ params["ws"].T + params["bs"][0])
    wmsg = message * edge_w
    m_sum = jax.ops.segment_sum(wmsg, dst_idx, num_segments=n)
    u_in = m_sum + feat
    hh = _silu(u_in @ params["u1"] + params["c1"])
    scale = params["bn_g"] * jax.lax.rsqrt(params["bn_v"] + 1e-5)
    shift = params["bn_b"] - params["bn_m"] * scale
    hh = hh * scale + shift
    out = hh @ params["u2"] + params["c2"]
    return out + feat, d_new


def init_params(key, hidden_dim, edge_dim):
    ks = jax.random.split(key, 14)
    f32 = jnp.float32
    d_in = 2 * hidden_dim + edge_dim

    def lin(k, fan_in, fan_out):
        return jax.random.normal(k, (fan_in, fan_out), f32) / jnp.sqrt(f32(fan_in))

    return {
        # message network: Linear(2H+De -> H) packed as one matrix, then Linear(H -> H)
        "w1": lin(ks[0], d_in, hidden_dim),
        "b1": 0.1 * jax.random.normal(ks[1], (1, hidden_dim), f32),
        "w2": lin(ks[2], hidden_dim, hidden_dim),
        "b2": 0.1 * jax.random.normal(ks[3], (1, hidden_dim), f32),
        # soft edge network: Linear(H -> 1) stored as a [1, H] row (lane-reduce gate)
        "ws": lin(ks[4], hidden_dim, 1).T,
        "bs": 0.1 * jax.random.normal(ks[5], (1,), f32),
        # update network: Linear(H -> H), BN(H) eval-mode, Linear(H -> H)
        "u1": lin(ks[6], hidden_dim, hidden_dim),
        "c1": 0.1 * jax.random.normal(ks[7], (1, hidden_dim), f32),
        "u2": lin(ks[8], hidden_dim, hidden_dim),
        "c2": 0.1 * jax.random.normal(ks[9], (1, hidden_dim), f32),
        # synthetic (non-trivial) eval-mode BatchNorm params so the folded path is exercised
        "bn_g": 1.0 + 0.1 * jax.random.normal(ks[10], (1, hidden_dim), f32),
        "bn_b": 0.1 * jax.random.normal(ks[11], (1, hidden_dim), f32),
        "bn_m": 0.1 * jax.random.normal(ks[12], (1, hidden_dim), f32),
        "bn_v": 1.0 + 0.5 * jax.random.uniform(ks[13], (1, hidden_dim), dtype=f32),
    }


if __name__ == "__main__":
    HIDDEN_DIM = 32
    EDGE_DIM = 32      # edge_dim == hidden_dim so that `d += message` is well-defined
    N_NODES = 24
    N_EDGES = 200
    E_TILE = 128       # -> edges padded to 256, grid of 2 (exercises the accumulator)

    key = jax.random.PRNGKey(0)
    kp, kf, kd, ks, kt = jax.random.split(key, 5)

    params = init_params(kp, HIDDEN_DIM, EDGE_DIM)
    feat = jax.random.normal(kf, (N_NODES, HIDDEN_DIM), jnp.float32)
    d = jax.random.normal(kd, (N_EDGES, EDGE_DIM), jnp.float32)
    src_idx = jax.random.randint(ks, (N_EDGES,), 0, N_NODES, dtype=jnp.int32)
    dst_idx = jax.random.randint(kt, (N_EDGES,), 0, N_NODES, dtype=jnp.int32)

    feat_new, d_new = net3d_layer(params, feat, d, src_idx, dst_idx, e_tile=E_TILE)
    jax.block_until_ready((feat_new, d_new))

    feat_ref, d_ref = net3d_layer_ref(params, feat, d, src_idx, dst_idx)
    assert feat_new.shape == (N_NODES, HIDDEN_DIM) and d_new.shape == (N_EDGES, EDGE_DIM)
    # bf16 MXU operands (f32 accumulation) vs. a pure-f32 reference -> ~1e-2-level agreement.
    assert jnp.allclose(feat_new, feat_ref, rtol=3e-2, atol=3e-2), "node feature mismatch"
    assert jnp.allclose(d_new, d_ref, rtol=3e-2, atol=3e-2), "edge feature mismatch"

    print("KERNEL_OK")
</pallas_src>

<mosaic_0001>
module attributes {stable_mosaic.version = 11 : i64} {
  func.func @_net3d_kernel(%arg0: i32, %arg1: memref<128x1xi32, #tpu.memory_space<vmem>>, %arg2: memref<128x1xi32, #tpu.memory_space<vmem>>, %arg3: memref<1x128xi32, #tpu.memory_space<vmem>>, %arg4: memref<24x128xf32, #tpu.memory_space<vmem>>, %arg5: memref<24x128xbf16, #tpu.memory_space<vmem>>, %arg6: memref<128x128xf32, #tpu.memory_space<vmem>>, %arg7: memref<384x128xbf16, #tpu.memory_space<vmem>>, %arg8: memref<1x128xf32, #tpu.memory_space<vmem>>, %arg9: memref<128x128xbf16, #tpu.memory_space<vmem>>, %arg10: memref<1x128xf32, #tpu.memory_space<vmem>>, %arg11: memref<1x128xf32, #tpu.memory_space<vmem>>, %arg12: memref<1xf32, #tpu.memory_space<smem>>, %arg13: memref<128x128xbf16, #tpu.memory_space<vmem>>, %arg14: memref<1x128xf32, #tpu.memory_space<vmem>>, %arg15: memref<128x128xbf16, #tpu.memory_space<vmem>>, %arg16: memref<1x128xf32, #tpu.memory_space<vmem>>, %arg17: memref<1x128xf32, #tpu.memory_space<vmem>>, %arg18: memref<1x128xf32, #tpu.memory_space<vmem>>, %arg19: memref<128x128xf32, #tpu.memory_space<vmem>>, %arg20: memref<24x128xf32, #tpu.memory_space<vmem>>, %arg21: memref<24x128xf32, #tpu.memory_space<vmem>>) attributes {dimension_semantics = [#tpu.dimension_semantics<arbitrary>], iteration_bounds = array<i64: 2>, scalar_prefetch = 0 : i64, scratch_operands = 1 : i64, tpu.core_type = #tpu.core_type<tc>, window_params = [{transform_indices = @transform_0, window_bounds = array<i64: 128, 1>}, {transform_indices = @transform_1, window_bounds = array<i64: 128, 1>}, {transform_indices = @transform_2, window_bounds = array<i64: 1, 128>}, {pipeline_mode = #tpu.pipeline_mode<synchronous>, transform_indices = @transform_3, window_bounds = array<i64: 24, 128>}, {pipeline_mode = #tpu.pipeline_mode<synchronous>, transform_indices = @transform_4, window_bounds = array<i64: 24, 128>}, {transform_indices = @transform_5, window_bounds = array<i64: 128, 128>}, {pipeline_mode = #tpu.pipeline_mode<synchronous>, transform_indices = @transform_6, window_bounds = array<i64: 384, 128>}, {pipeline_mode = #tpu.pipeline_mode<synchronous>, transform_indices = @transform_7, window_bounds = array<i64: 1, 128>}, {pipeline_mode = #tpu.pipeline_mode<synchronous>, transform_indices = @transform_8, window_bounds = array<i64: 128, 128>}, {pipeline_mode = #tpu.pipeline_mode<synchronous>, transform_indices = @transform_9, window_bounds = array<i64: 1, 128>}, {pipeline_mode = #tpu.pipeline_mode<synchronous>, transform_indices = @transform_10, window_bounds = array<i64: 1, 128>}, {transform_indices = @transform_11, window_bounds = array<i64: 1>}, {pipeline_mode = #tpu.pipeline_mode<synchronous>, transform_indices = @transform_12, window_bounds = array<i64: 128, 128>}, {pipeline_mode = #tpu.pipeline_mode<synchronous>, transform_indices = @transform_13, window_bounds = array<i64: 1, 128>}, {pipeline_mode = #tpu.pipeline_mode<synchronous>, transform_indices = @transform_14, window_bounds = array<i64: 128, 128>}, {pipeline_mode = #tpu.pipeline_mode<synchronous>, transform_indices = @transform_15, window_bounds = array<i64: 1, 128>}, {pipeline_mode = #tpu.pipeline_mode<synchronous>, transform_indices = @transform_16, window_bounds = array<i64: 1, 128>}, {pipeline_mode = #tpu.pipeline_mode<synchronous>, transform_indices = @transform_17, window_bounds = array<i64: 1, 128>}, {transform_indices = @transform_18, window_bounds = array<i64: 128, 128>}, {pipeline_mode = #tpu.pipeline_mode<synchronous>, transform_indices = @transform_19, window_bounds = array<i64: 24, 128>}]} {
    %c0_i32 = arith.constant 0 : i32
    %0 = arith.cmpi eq, %arg0, %c0_i32 : i32
    %1 = arith.extui %0 : i1 to i32
    %c0_i32_0 = arith.constant 0 : i32
    %2 = arith.cmpi ne, %1, %c0_i32_0 : i32
    scf.if %2 {
      %cst_36 = arith.constant 0.000000e+00 : f32
      %79 = vector.broadcast %cst_36 : f32 to vector<24x128xf32>
      %c0_37 = arith.constant 0 : index
      %c0_38 = arith.constant 0 : index
      %80 = vector.load %arg21[%c0_37, %c0_38] : memref<24x128xf32, #tpu.memory_space<vmem>>, vector<24x128xf32>
      tpu.vector_store %arg21[%c0_37, %c0_38], %79 {strides = array<i32>} : memref<24x128xf32, #tpu.memory_space<vmem>>, vector<24x128xf32>,
    } else {
    }
    %c0 = arith.constant 0 : index
    %c0_1 = arith.constant 0 : index
    %3 = vector.load %arg5[%c0, %c0_1] : memref<24x128xbf16, #tpu.memory_space<vmem>>, vector<24x128xbf16>
    %c0_2 = arith.constant 0 : index
    %c0_3 = arith.constant 0 : index
    %4 = vector.load %arg6[%c0_2, %c0_3] : memref<128x128xf32, #tpu.memory_space<vmem>>, vector<128x128xf32>
    %5 = tpu.iota {dimensions = array<i32: 1>} : vector<128x24xi32>
    %c0_4 = arith.constant 0 : index
    %c0_5 = arith.constant 0 : index
    %6 = vector.load %arg1[%c0_4, %c0_5] : memref<128x1xi32, #tpu.memory_space<vmem>>, vector<128x1xi32>
    %7 = vector.broadcast %6 : vector<128x1xi32> to vector<128x24xi32>
    %8 = arith.cmpi eq, %5, %7 : vector<128x24xi32>
    %9 = arith.extui %8 : vector<128x24xi1> to vector<128x24xi32>
    %10 = arith.sitofp %9 : vector<128x24xi32> to vector<128x24xf32>
    %11 = arith.truncf %10 : vector<128x24xf32> to vector<128x24xbf16>
    %c0_6 = arith.constant 0 : index
    %c0_7 = arith.constant 0 : index
    %12 = vector.load %arg2[%c0_6, %c0_7] : memref<128x1xi32, #tpu.memory_space<vmem>>, vector<128x1xi32>
    %13 = vector.broadcast %12 : vector<128x1xi32> to vector<128x24xi32>
    %14 = arith.cmpi eq, %5, %13 : vector<128x24xi32>
    %15 = arith.extui %14 : vector<128x24xi1> to vector<128x24xi32>
    %16 = arith.sitofp %15 : vector<128x24xi32> to vector<128x24xf32>
    %17 = arith.truncf %16 : vector<128x24xf32> to vector<128x24xbf16>
    %cst = arith.constant dense<0.000000e+00> : vector<128x128xf32>
    %18 = tpu.matmul %11, %3, %cst {dimension_numbers = #tpu.dot_dimension_numbers<[1], [0], [0], [1], [0, 0, 1, 1], [], []>} : vector<128x24xbf16>, vector<24x128xbf16>, vector<128x128xf32> -> vector<128x128xf32>
    %cst_8 = arith.constant dense<0.000000e+00> : vector<128x128xf32>
    %19 = tpu.matmul %17, %3, %cst_8 {dimension_numbers = #tpu.dot_dimension_numbers<[1], [0], [0], [1], [0, 0, 1, 1], [], []>} : vector<128x24xbf16>, vector<24x128xbf16>, vector<128x128xf32> -> vector<128x128xf32>
    %20 = arith.truncf %18 : vector<128x128xf32> to vector<128x128xbf16>
    %21 = arith.truncf %19 : vector<128x128xf32> to vector<128x128xbf16>
    %22 = arith.truncf %4 : vector<128x128xf32> to vector<128x128xbf16>
    %23 = tpu.concatenate %20, %21, %22 in 1 : vector<128x128xbf16>, vector<128x128xbf16>, vector<128x128xbf16> -> vector<128x384xbf16>
    %c0_9 = arith.constant 0 : index
    %c0_10 = arith.constant 0 : index
    %24 = vector.load %arg7[%c0_9, %c0_10] : memref<384x128xbf16, #tpu.memory_space<vmem>>, vector<384x128xbf16>
    %cst_11 = arith.constant dense<0.000000e+00> : vector<128x128xf32>
    %25 = tpu.matmul %23, %24, %cst_11 {dimension_numbers = #tpu.dot_dimension_numbers<[1], [0], [0], [1], [0, 0, 1, 1], [], []>} : vector<128x384xbf16>, vector<384x128xbf16>, vector<128x128xf32> -> vector<128x128xf32>
    %c0_12 = arith.constant 0 : index
    %c0_13 = arith.constant 0 : index
    %26 = vector.load %arg8[%c0_12, %c0_13] : memref<1x128xf32, #tpu.memory_space<vmem>>, vector<1x128xf32>
    %27 = vector.broadcast %26 : vector<1x128xf32> to vector<128x128xf32>
    %28 = arith.addf %25, %27 : vector<128x128xf32>
    %29 = arith.negf %28 : vector<128x128xf32>
    %30 = math.exp %29 : vector<128x128xf32>
    %cst_14 = arith.constant 1.000000e+00 : f32
    %31 = vector.broadcast %cst_14 : f32 to vector<128x128xf32>
    %32 = arith.addf %31, %30 : vector<128x128xf32>
    %33 = arith.divf %31, %32 : vector<128x128xf32>
    %34 = arith.mulf %28, %33 : vector<128x128xf32>
    %35 = arith.truncf %34 : vector<128x128xf32> to vector<128x128xbf16>
    %c0_15 = arith.constant 0 : index
    %c0_16 = arith.constant 0 : index
    %36 = vector.load %arg9[%c0_15, %c0_16] : memref<128x128xbf16, #tpu.memory_space<vmem>>, vector<128x128xbf16>
    %cst_17 = arith.constant dense<0.000000e+00> : vector<128x128xf32>
    %37 = tpu.matmul %35, %36, %cst_17 {dimension_numbers = #tpu.dot_dimension_numbers<[1], [0], [0], [1], [0, 0, 1, 1], [], []>} : vector<128x128xbf16>, vector<128x128xbf16>, vector<128x128xf32> -> vector<128x128xf32>
    %c0_18 = arith.constant 0 : index
    %c0_19 = arith.constant 0 : index
    %38 = vector.load %arg10[%c0_18, %c0_19] : memref<1x128xf32, #tpu.memory_space<vmem>>, vector<1x128xf32>
    %39 = vector.broadcast %38 : vector<1x128xf32> to vector<128x128xf32>
    %40 = arith.addf %37, %39 : vector<128x128xf32>
    %41 = arith.negf %40 : vector<128x128xf32>
    %42 = math.exp %41 : vector<128x128xf32>
    %cst_20 = arith.constant 1.000000e+00 : f32
    %43 = vector.broadcast %cst_20 : f32 to vector<128x128xf32>
    %44 = arith.addf %43, %42 : vector<128x128xf32>
    %45 = arith.divf %43, %44 : vector<128x128xf32>
    %46 = arith.mulf %40, %45 : vector<128x128xf32>
    %47 = arith.addf %4, %46 : vector<128x128xf32>
    %c0_21 = arith.constant 0 : index
    %c0_22 = arith.constant 0 : index
    %48 = vector.load %arg19[%c0_21, %c0_22] : memref<128x128xf32, #tpu.memory_space<vmem>>, vector<128x128xf32>
    tpu.vector_store %arg19[%c0_21, %c0_22], %47 {strides = array<i32>} : memref<128x128xf32, #tpu.memory_space<vmem>>, vector<128x128xf32>,
    %c0_23 = arith.constant 0 : index
    %c0_24 = arith.constant 0 : index
    %49 = vector.load %arg11[%c0_23, %c0_24] : memref<1x128xf32, #tpu.memory_space<vmem>>, vector<1x128xf32>
    %50 = vector.broadcast %49 : vector<1x128xf32> to vector<128x128xf32>
    %51 = arith.mulf %46, %50 : vector<128x128xf32>
    %cst_25 = arith.constant dense<0.000000e+00> : vector<128xf32>
    %52 = vector.multi_reduction <add>, %51, %cst_25 [1] : vector<128x128xf32> to vector<128xf32>
    %53 = vector.shape_cast %52 : vector<128xf32> to vector<128x1xf32>
    %c0_26 = arith.constant 0 : index
    %54 = memref.load %arg12[%c0_26] : memref<1xf32, #tpu.memory_space<smem>>
    %55 = vector.broadcast %54 : f32 to vector<128x1xf32>
    %56 = arith.addf %53, %55 : vector<128x1xf32>
    %57 = arith.negf %56 : vector<128x1xf32>
    %58 = math.exp %57 : vector<128x1xf32>
    %cst_27 = arith.constant 1.000000e+00 : f32
    %59 = vector.broadcast %cst_27 : f32 to vector<128x1xf32>
    %60 = arith.addf %59, %58 : vector<128x1xf32>
    %61 = arith.divf %59, %60 : vector<128x1xf32>
    %62 = vector.broadcast %61 : vector<128x1xf32> to vector<128x128xf32>
    %63 = arith.mulf %46, %62 : vector<128x128xf32>
    %64 = tpu.iota {dimensions = array<i32: 0>} : vector<24x128xi32>
    %c0_28 = arith.constant 0 : index
    %c0_29 = arith.constant 0 : index
    %65 = vector.load %arg3[%c0_28, %c0_29] : memref<1x128xi32, #tpu.memory_space<vmem>>, vector<1x128xi32>
    %66 = vector.broadcast %65 : vector<1x128xi32> to vector<24x128xi32>
    %67 = arith.cmpi eq, %64, %66 : vector<24x128xi32>
    %68 = arith.extui %67 : vector<24x128xi1> to vector<24x128xi32>
    %69 = arith.sitofp %68 : vector<24x128xi32> to vector<24x128xf32>
    %70 = arith.truncf %69 : vector<24x128xf32> to vector<24x128xbf16>
    %c0_30 = arith.constant 0 : index
    %c0_31 = arith.constant 0 : index
    %71 = vector.load %arg21[%c0_30, %c0_31] : memref<24x128xf32, #tpu.memory_space<vmem>>, vector<24x128xf32>
    %72 = arith.truncf %63 : vector<128x128xf32> to vector<128x128xbf16>
    %cst_32 = arith.constant dense<0.000000e+00> : vector<24x128xf32>
    %73 = tpu.matmul %70, %72, %cst_32 {dimension_numbers = #tpu.dot_dimension_numbers<[1], [0], [0], [1], [0, 0, 1, 1], [], []>} : vector<24x128xbf16>, vector<128x128xbf16>, vector<24x128xf32> -> vector<24x128xf32>
    %74 = arith.addf %71, %73 : vector<24x128xf32>
    %c0_33 = arith.constant 0 : index
    %c0_34 = arith.constant 0 : index
    %75 = vector.load %arg21[%c0_33, %c0_34] : memref<24x128xf32, #tpu.memory_space<vmem>>, vector<24x128xf32>
    tpu.vector_store %arg21[%c0_33, %c0_34], %74 {strides = array<i32>} : memref<24x128xf32, #tpu.memory_space<vmem>>, vector<24x128xf32>,
    %c1_i32 = arith.constant 1 : i32
    %76 = arith.cmpi eq, %arg0, %c1_i32 : i32
    %77 = arith.extui %76 : i1 to i32
    %c0_i32_35 = arith.constant 0 : i32
    %78 = arith.cmpi ne, %77, %c0_i32_35 : i32
    scf.if %78 {
      %c0_36 = arith.constant 0 : index
      %c0_37 = arith.constant 0 : index
      %79 = vector.load %arg4[%c0_36, %c0_37] : memref<24x128xf32, #tpu.memory_space<vmem>>, vector<24x128xf32>
      %c0_38 = arith.constant 0 : index
      %c0_39 = arith.constant 0 : index
      %80 = vector.load %arg21[%c0_38, %c0_39] : memref<24x128xf32, #tpu.memory_space<vmem>>, vector<24x128xf32>
      %81 = arith.addf %80, %79 : vector<24x128xf32>
      %82 = arith.truncf %81 : vector<24x128xf32> to vector<24x128xbf16>
      %c0_40 = arith.constant 0 : index
      %c0_41 = arith.constant 0 : index
      %83 = vector.load %arg13[%c0_40, %c0_41] : memref<128x128xbf16, #tpu.memory_space<vmem>>, vector<128x128xbf16>
      %cst_42 = arith.constant dense<0.000000e+00> : vector<24x128xf32>
      %84 = tpu.matmul %82, %83, %cst_42 {dimension_numbers = #tpu.dot_dimension_numbers<[1], [0], [0], [1], [0, 0, 1, 1], [], []>} : vector<24x128xbf16>, vector<128x128xbf16>, vector<24x128xf32> -> vector<24x128xf32>
      %c0_43 = arith.constant 0 : index
      %c0_44 = arith.constant 0 : index
      %85 = vector.load %arg14[%c0_43, %c0_44] : memref<1x128xf32, #tpu.memory_space<vmem>>, vector<1x128xf32>
      %86 = vector.broadcast %85 : vector<1x128xf32> to vector<24x128xf32>
      %87 = arith.addf %84, %86 : vector<24x128xf32>
      %88 = arith.negf %87 : vector<24x128xf32>
      %89 = math.exp %88 : vector<24x128xf32>
      %cst_45 = arith.constant 1.000000e+00 : f32
      %90 = vector.broadcast %cst_45 : f32 to vector<24x128xf32>
      %91 = arith.addf %90, %89 : vector<24x128xf32>
      %92 = arith.divf %90, %91 : vector<24x128xf32>
      %93 = arith.mulf %87, %92 : vector<24x128xf32>
      %c0_46 = arith.constant 0 : index
      %c0_47 = arith.constant 0 : index
      %94 = vector.load %arg17[%c0_46, %c0_47] : memref<1x128xf32, #tpu.memory_space<vmem>>, vector<1x128xf32>
      %95 = vector.broadcast %94 : vector<1x128xf32> to vector<24x128xf32>
      %96 = arith.mulf %93, %95 : vector<24x128xf32>
      %c0_48 = arith.constant 0 : index
      %c0_49 = arith.constant 0 : index
      %97 = vector.load %arg18[%c0_48, %c0_49] : memref<1x128xf32, #tpu.memory_space<vmem>>, vector<1x128xf32>
      %98 = vector.broadcast %97 : vector<1x128xf32> to vector<24x128xf32>
      %99 = arith.addf %96, %98 : vector<24x128xf32>
      %100 = arith.truncf %99 : vector<24x128xf32> to vector<24x128xbf16>
      %c0_50 = arith.constant 0 : index
      %c0_51 = arith.constant 0 : index
      %101 = vector.load %arg15[%c0_50, %c0_51] : memref<128x128xbf16, #tpu.memory_space<vmem>>, vector<128x128xbf16>
      %cst_52 = arith.constant dense<0.000000e+00> : vector<24x128xf32>
      %102 = tpu.matmul %100, %101, %cst_52 {dimension_numbers = #tpu.dot_dimension_numbers<[1], [0], [0], [1], [0, 0, 1, 1], [], []>} : vector<24x128xbf16>, vector<128x128xbf16>, vector<24x128xf32> -> vector<24x128xf32>
      %c0_53 = arith.constant 0 : index
      %c0_54 = arith.constant 0 : index
      %103 = vector.load %arg16[%c0_53, %c0_54] : memref<1x128xf32, #tpu.memory_space<vmem>>, vector<1x128xf32>
      %104 = vector.broadcast %103 : vector<1x128xf32> to vector<24x128xf32>
      %105 = arith.addf %102, %104 : vector<24x128xf32>
      %106 = arith.addf %105, %79 : vector<24x128xf32>
      %c0_55 = arith.constant 0 : index
      %c0_56 = arith.constant 0 : index
      %107 = vector.load %arg20[%c0_55, %c0_56] : memref<24x128xf32, #tpu.memory_space<vmem>>, vector<24x128xf32>
      tpu.vector_store %arg20[%c0_55, %c0_56], %106 {strides = array<i32>} : memref<24x128xf32, #tpu.memory_space<vmem>>, vector<24x128xf32>,
    } else {
    }
    return
  }
  func.func @transform_0(%arg0: i32) -> (i32, i32) {
    %c0_i32 = arith.constant 0 : i32
    %c0_i32_0 = arith.constant 0 : i32
    return %arg0, %c0_i32 : i32, i32
  }
  func.func @transform_1(%arg0: i32) -> (i32, i32) {
    %c0_i32 = arith.constant 0 : i32
    %c0_i32_0 = arith.constant 0 : i32
    return %arg0, %c0_i32 : i32, i32
  }
  func.func @transform_2(%arg0: i32) -> (i32, i32) {
    %c0_i32 = arith.constant 0 : i32
    %c0_i32_0 = arith.constant 0 : i32
    return %c0_i32, %arg0 : i32, i32
  }
  func.func @transform_3(%arg0: i32) -> (i32, i32) {
    %c0_i32 = arith.constant 0 : i32
    %c0_i32_0 = arith.constant 0 : i32
    %c0_i32_1 = arith.constant 0 : i32
    return %c0_i32, %c0_i32_0 : i32, i32
  }
  func.func @transform_4(%arg0: i32) -> (i32, i32) {
    %c0_i32 = arith.constant 0 : i32
    %c0_i32_0 = arith.constant 0 : i32
    %c0_i32_1 = arith.constant 0 : i32
    return %c0_i32, %c0_i32_0 : i32, i32
  }
  func.func @transform_5(%arg0: i32) -> (i32, i32) {
    %c0_i32 = arith.constant 0 : i32
    %c0_i32_0 = arith.constant 0 : i32
    return %arg0, %c0_i32 : i32, i32
  }
  func.func @transform_6(%arg0: i32) -> (i32, i32) {
    %c0_i32 = arith.constant 0 : i32
    %c0_i32_0 = arith.constant 0 : i32
    %c0_i32_1 = arith.constant 0 : i32
    return %c0_i32, %c0_i32_0 : i32, i32
  }
  func.func @transform_7(%arg0: i32) -> (i32, i32) {
    %c0_i32 = arith.constant 0 : i32
    %c0_i32_0 = arith.constant 0 : i32
    %c0_i32_1 = arith.constant 0 : i32
    return %c0_i32, %c0_i32_0 : i32, i32
  }
  func.func @transform_8(%arg0: i32) -> (i32, i32) {
    %c0_i32 = arith.constant 0 : i32
    %c0_i32_0 = arith.constant 0 : i32
    %c0_i32_1 = arith.constant 0 : i32
    return %c0_i32, %c0_i32_0 : i32, i32
  }
  func.func @transform_9(%arg0: i32) -> (i32, i32) {
    %c0_i32 = arith.constant 0 : i32
    %c0_i32_0 = arith.constant 0 : i32
    %c0_i32_1 = arith.constant 0 : i32
    return %c0_i32, %c0_i32_0 : i32, i32
  }
  func.func @transform_10(%arg0: i32) -> (i32, i32) {
    %c0_i32 = arith.constant 0 : i32
    %c0_i32_0 = arith.constant 0 : i32
    %c0_i32_1 = arith.constant 0 : i32
    return %c0_i32, %c0_i32_0 : i32, i32
  }
  func.func @transform_11(%arg0: i32) -> i32 {
    %c0_i32 = arith.constant 0 : i32
    %c0_i32_0 = arith.constant 0 : i32
    return %c0_i32 : i32
  }
  func.func @transform_12(%arg0: i32) -> (i32, i32) {
    %c0_i32 = arith.constant 0 : i32
    %c0_i32_0 = arith.constant 0 : i32
    %c0_i32_1 = arith.constant 0 : i32
    return %c0_i32, %c0_i32_0 : i32, i32
  }
  func.func @transform_13(%arg0: i32) -> (i32, i32) {
    %c0_i32 = arith.constant 0 : i32
    %c0_i32_0 = arith.constant 0 : i32
    %c0_i32_1 = arith.constant 0 : i32
    return %c0_i32, %c0_i32_0 : i32, i32
  }
  func.func @transform_14(%arg0: i32) -> (i32, i32) {
    %c0_i32 = arith.constant 0 : i32
    %c0_i32_0 = arith.constant 0 : i32
    %c0_i32_1 = arith.constant 0 : i32
    return %c0_i32, %c0_i32_0 : i32, i32
  }
  func.func @transform_15(%arg0: i32) -> (i32, i32) {
    %c0_i32 = arith.constant 0 : i32
    %c0_i32_0 = arith.constant 0 : i32
    %c0_i32_1 = arith.constant 0 : i32
    return %c0_i32, %c0_i32_0 : i32, i32
  }
  func.func @transform_16(%arg0: i32) -> (i32, i32) {
    %c0_i32 = arith.constant 0 : i32
    %c0_i32_0 = arith.constant 0 : i32
    %c0_i32_1 = arith.constant 0 : i32
    return %c0_i32, %c0_i32_0 : i32, i32
  }
  func.func @transform_17(%arg0: i32) -> (i32, i32) {
    %c0_i32 = arith.constant 0 : i32
    %c0_i32_0 = arith.constant 0 : i32
    %c0_i32_1 = arith.constant 0 : i32
    return %c0_i32, %c0_i32_0 : i32, i32
  }
  func.func @transform_18(%arg0: i32) -> (i32, i32) {
    %c0_i32 = arith.constant 0 : i32
    %c0_i32_0 = arith.constant 0 : i32
    return %arg0, %c0_i32 : i32, i32
  }
  func.func @transform_19(%arg0: i32) -> (i32, i32) {
    %c0_i32 = arith.constant 0 : i32
    %c0_i32_0 = arith.constant 0 : i32
    %c0_i32_1 = arith.constant 0 : i32
    return %c0_i32, %c0_i32_0 : i32, i32
  }
}

</mosaic_0001>

<bundles_post_ra>
// kernel: net3d_layer.1
= control target key start
LH: loop header
LB: loop body
LE: loop exit
PB: predicated region body
PF: predicated region fallthrough
CT: control target
= control target key end

     0   :  { %s4426_s0 = inlined_call_operand.vmem [shape: s32[256,1], index: 0, kind: input, shape index: {}]   ;;  %s4427_s1 = inlined_call_operand.vmem [shape: s32[256,1], index: 1, kind: input, shape index: {}]   ;;  %s4428_s2 = inlined_call_operand.vmem [shape: s32[1,256], index: 2, kind: input, shape index: {}]   ;;  %s4429_s3 = inlined_call_operand.vmem [shape: f32[24,128], index: 3, kind: input, shape index: {}]   ;;  %s4430_s4 = inlined_call_operand.vmem [shape: bf16[24,128], index: 4, kind: input, shape index: {}]   ;;  %s4431_s5 = inlined_call_operand.vmem [shape: f32[256,128], index: 5, kind: input, shape index: {}, may-alias: {5,18}]   ;;  %s4432_s6 = inlined_call_operand.vmem [shape: bf16[384,128], index: 6, kind: input, shape index: {}]   ;;  %s4433_s7 = inlined_call_operand.vmem [shape: f32[1,128], index: 7, kind: input, shape index: {}]   ;;  %s4434_s8 = inlined_call_operand.vmem [shape: bf16[128,128], index: 8, kind: input, shape index: {}]   ;;  %s4435_s9 = inlined_call_operand.vmem [shape: f32[1,128], index: 9, kind: input, shape index: {}]   ;;  %s4436_s10 = inlined_call_operand.vmem [shape: f32[1,128], index: 10, kind: input, shape index: {}]   ;;  %s4437_s11 = inlined_call_operand.<no memory space> [shape: f32[1], index: 11, kind: input, shape index: {}]   ;;  %s4438_s12 = inlined_call_operand.vmem [shape: bf16[128,128], index: 12, kind: input, shape index: {}]   ;;  %s4439_s13 = inlined_call_operand.vmem [shape: f32[1,128], index: 13, kind: input, shape index: {}]   ;;  %s4440_s14 = inlined_call_operand.vmem [shape: bf16[128,128], index: 14, kind: input, shape index: {}]   ;;  %s4441_s15 = inlined_call_operand.vmem [shape: f32[1,128], index: 15, kind: input, shape index: {}]   ;;  %s4442_s16 = inlined_call_operand.vmem [shape: f32[1,128], index: 16, kind: input, shape index: {}]   ;;  %s4443_s17 = inlined_call_operand.vmem [shape: f32[1,128], index: 17, kind: input, shape index: {}]   ;;  %s4444_s18 = inlined_call_operand.vmem [shape: f32[256,128], index: 18, kind: output, shape index: {0}, may-alias: {5,18}]   ;;  %s4445_s19 = inlined_call_operand.hbm [shape: f32[24,128], index: 19, kind: output, shape index: {1}]  }
   0x1   :  { %4449 = sst [smem:[#allocation8_spill]] %s4426_s0 }
   0x2   :  { %4450 = sst [smem:[#allocation9_spill]] %s4427_s1 }
   0x3   :  { %4451 = sst [smem:[#allocation10_spill]] %s4428_s2 }
   0x4   :  { %4452 = sst [smem:[#allocation11_spill]] %s4429_s3 }
   0x5   :  { %4453 = sst [smem:[#allocation12_spill]] %s4439_s13 }
   0x6   :  { %4454 = sst [smem:[#allocation13_spill]] %s4441_s15 }
   0x7   :  { %4455 = sst [smem:[#allocation14_spill]] %s4442_s16 }
   0x8   :  { %4456 = sst [smem:[#allocation15_spill]] %s4443_s17 }
   0x9   :  { %4457 = sst [smem:[#allocation16_spill]] %s4445_s19 }
   0xa   :  { %25 = sst [smem:[#allocation3]] %s4437_s11 }
   0xb   :  { %26 = vsyncpa [#allocation5], 0  ;;  %s3645_s20 = smov 0  }
   0xc LB: > { %4458 = sst [smem:[#allocation7_spill]] %s3533_s20  ;;  %s3651_s21 = sadd.s32 4294967295, %s3533_s20   ;;  %s3533_s20 = sphi %s3645_s20, %s32_s20  }
   0xd   : > { %p2729_p0 = scmp.ge.s32.totalorder %s3533_s20, 1  ;;  %p568_p1 = scmp.lt.s32.totalorder %s3533_s20, 3 }
   0xf   : > { %p569_p2 = pnand %p2729_p0, %p568_p1 }
  0x10   : > { %s2730_s11 = sshll.u32 (!%p569_p2), %s3651_s21, 4  ;;  %p649_p3 = scmp.lt.s32.totalorder (!%p569_p2), %s3651_s21, 1 }
  0x11   : > { %572 = sbr.rel (%p569_p2) target bundleno = 1869 (0x74d), region = 92  ;;  %p638_p4 = scmp.lt.s32.totalorder (!%p569_p2), %s2730_s11, 31 }
  0x12   : > { %s4459_s23 = sld [smem:[#allocation10_spill]] (!%p569_p2)  ;;  %s4460_s27 = sld [smem:[#allocation8_spill]] (!%p569_p2) }
  0x13   : > { %s4461_s30 = sld [smem:[#allocation9_spill]] (!%p569_p2)  ;;  %p2738_p5 = scmp.ne.s32.totalorder (!%p569_p2), %s3651_s21, 0 }
  0x18   : > { %s3658_s1 = scalar_select %p649_p3, %s3651_s21, 1 }
  0x19   : > { %s4471_s11 = smov (!%p638_p4, %s2730_s11), 31  ;;  %668 = sbr.rel (%p2738_p5) target bundleno = 32 (0x20), region = 96 }
  0x1a   : > { %s651_s24 = scalar_lea.vmem %s4459_s23, %s3658_s1  ;;  %s2731_s25 = sshll.u32 %s4471_s11, 3  ;;  %v3535_v0 = vmov (!%p2738_p5), 0.0  }
  0x1b   : > { %s3667_s28 = scalar_lea.vmem %s4460_s27, %s2731_s25  ;;  %s3672_s20 = scalar_lea.vmem %s4461_s30, %s2731_s25  ;;  %669 = vst [vmem:[#allocation2] sm:$0xff] (!%p2738_p5), %v3535_v0  ;;  %670 = vst [vmem:[#allocation2 + $0x8] sm:$0xff] (!%p2738_p5), %v3535_v0 }
  0x1c   : > { %s3677_s17 = scalar_lea.vmem %s4431_s5, %s2731_s25  ;;  %s3682_s22 = scalar_lea.vmem %s4444_s18, %s2731_s25  ;;  %671 = vst [vmem:[#allocation2 + $0x10] sm:$0xff] (!%p2738_p5), %v3535_v0 }
  0x20 PF: > { %v813_v1 = vld [vmem:[%s3672_s20] sm:$0xff]  ;;  %v3536_v3 = vmov 0   ;;  %v814_v4 = vld [vmem:[%s3672_s20 + $0x8] sm:$0xff]  ;;  %v815_v6 = vld [vmem:[%s3672_s20 + $0x10] sm:$0xff]  ;;  %vm967_vm0 = vcmask 1043456   ;;  %v691_v39 = vlaneseq  ;;  %vm942_vm5 = vcmask 195584  }
  0x21   : > { %v693_v2 = vld [vmem:[%s3667_s28] sm:$0xff]  ;;  %3242 = vset.pattern.permute.xlu1 %v3536_v3  ;;  %3241 = vset.pattern.permute.xlu0 %v3536_v3  ;;  %v694_v5 = vld [vmem:[%s3667_s28 + $0x8] sm:$0xff]  ;;  %v816_v7 = vld [vmem:[%s3672_s20 + $0x18] sm:$0xff]  ;;  %v3537_v45 = vmov 0.0   ;;  %p2880_p6 = scmp.ne.s32.totalorder %s3651_s21, 1 }
  0x22   : > { %830 = vperm.xlu0 %3241, %v813_v1   ;;  %710 = vperm.xlu1 %3242, %v693_v2   ;;  %v695_v8 = vld [vmem:[%s3667_s28 + $0x10] sm:$0xff]  ;;  %v696_v9 = vld [vmem:[%s3667_s28 + $0x18] sm:$0xff]  ;;  %v3243_v10 = vld [vmem:[%s4430_s4] sm:$0xff]   ;;  %v3730_v40 = vand.u32 127, %v691_v39  ;;  %s4463_s19 = sld [smem:[#allocation11_spill]] (!%p2880_p6)  ;;  %s4464_s27 = sld [smem:[#allocation12_spill]] (!%p2880_p6) }
  0x23   : > { %v3244_v11 = vld [vmem:[%s4430_s4 + $0x8] ss:$0 sps:$4 sm:$0xff]   ;;  %v817_v12 = vld [vmem:[%s3672_s20 + $0x20] sm:$0xff]  ;;  %3074 = vmatprep.subr.bf16.mxu1 %v3243_v10  ;;  %3054 = vmatprep.subr.bf16.mxu0 %v3243_v10  ;;  %v819_v17 = vld [vmem:[%s3672_s20 + $0x30] sm:$0xff]  ;;  %s4465_s0 = sld [smem:[#allocation14_spill]] (!%p2880_p6)  ;;  %s4466_s15 = sld [smem:[#allocation15_spill]] (!%p2880_p6) }
  0x24   : > { %v818_v13 = vld [vmem:[%s3672_s20 + $0x28] sm:$0xff]  ;;  %v969_v14 = vsel %vm967_vm0, %v3244_v11, 0  ;;  %3075 = vmatpush3.bf16.msra.mxu1 %v3243_v10  ;;  %3055 = vmatpush3.bf16.msra.mxu0 %v3243_v10  ;;  %v697_v15 = vld [vmem:[%s3667_s28 + $0x20] sm:$0xff]  ;;  %v820_v18 = vld [vmem:[%s3672_s20 + $0x38] sm:$0xff]  ;;  %s4467_s11 = sld [smem:[#allocation13_spill]] (!%p2880_p6) }
  0x25   : > { %3219 = vmatprep.subr.msk.bf16.mxu1 %vm967_vm0, %v3244_v11  ;;  %3218 = vmatprep.subr.msk.bf16.mxu0 %vm967_vm0, %v3244_v11  ;;  %v698_v16 = vld [vmem:[%s3667_s28 + $0x28] sm:$0xff]  ;;  %v699_v19 = vld [vmem:[%s3667_s28 + $0x30] sm:$0xff]  ;;  %v700_v20 = vld [vmem:[%s3667_s28 + $0x38] sm:$0xff] }
  0x26   : > { %833 = vperm.xlu0 %3241, %v814_v4   ;;  %713 = vperm.xlu1 %3242, %v694_v5   ;;  %v821_v21 = vld [vmem:[%s3672_s20 + $0x40] sm:$0xff]  ;;  %v822_v22 = vld [vmem:[%s3672_s20 + $0x48] sm:$0xff]  ;;  %v823_v25 = vld [vmem:[%s3672_s20 + $0x50] sm:$0xff] }
  0x27   : > { %v701_v23 = vld [vmem:[%s3667_s28 + $0x40] sm:$0xff]  ;;  %v702_v24 = vld [vmem:[%s3667_s28 + $0x48] sm:$0xff]  ;;  %v824_v26 = vld [vmem:[%s3672_s20 + $0x58] sm:$0xff] }
  0x28   : > { %3077 = vmatpush3.bf16.msra.mxu1 %v969_v14  ;;  %3057 = vmatpush3.bf16.msra.mxu0 %v969_v14  ;;  %v703_v27 = vld [vmem:[%s3667_s28 + $0x50] sm:$0xff]  ;;  %v704_v28 = vld [vmem:[%s3667_s28 + $0x58] sm:$0xff]  ;;  %v825_v29 = vld [vmem:[%s3672_s20 + $0x60] sm:$0xff] }
  0x29   : > { %v826_v30 = vld [vmem:[%s3672_s20 + $0x68] sm:$0xff]  ;;  %v705_v31 = vld [vmem:[%s3667_s28 + $0x60] sm:$0xff]  ;;  %v827_v33 = vld [vmem:[%s3672_s20 + $0x70] sm:$0xff] }
  0x2a   : > { %836 = vperm.xlu0 %3241, %v815_v6   ;;  %839 = vperm.xlu1 %3242, %v816_v7   ;;  %v706_v32 = vld [vmem:[%s3667_s28 + $0x68] sm:$0xff]  ;;  %v828_v34 = vld [vmem:[%s3672_s20 + $0x78] sm:$0xff]  ;;  %v707_v35 = vld [vmem:[%s3667_s28 + $0x70] sm:$0xff] }
  0x2b   : > { %v708_v36 = vld [vmem:[%s3667_s28 + $0x78] sm:$0xff]  ;;  %v3245_v37 = vld [vmem:[%s4432_s6 + $0x40] sm:$0xff]   ;;  %v3251_v57 = vld [vmem:[%s4432_s6 + $0x88] sm:$0xff]  }
  0x2c   : > { %v3248_v38 = vld [vmem:[%s4432_s6 + $0x80] sm:$0xff]   ;;  %2928 = vmatprep.subr.bf16.mxu0 %v3245_v37  ;;  %v3247_v0 = vld [vmem:[%s4432_s6 + $0x48] sm:$0xff]   ;;  %v3254_v1 = vld [vmem:[%s4432_s6 + $0x90] sm:$0xff]  }
  0x2d   : > { %3094 = vmatprep.subr.bf16.mxu1 %v3248_v38  ;;  %v3246_v62 = vld [vmem:[%s4432_s6] sm:$0xff]   ;;  %v3249_v6 = vld [vmem:[%s4432_s6 + $0x8] sm:$0xff]   ;;  %v3252_v14 = vld [vmem:[%s4432_s6 + $0x10] sm:$0xff]  }
  0x2e   : > { %716 = vperm.xlu0 %3241, %v695_v8   ;;  %719 = vperm.xlu1 %3242, %v696_v9   ;;  %v3250_v8 = vld [vmem:[%s4432_s6 + $0x50] sm:$0xff]   ;;  %v3257_v9 = vld [vmem:[%s4432_s6 + $0x98] sm:$0xff]  }
  0x32   : > { %842 = vperm.xlu0 %3241, %v817_v12   ;;  %845 = vperm.xlu1 %3242, %v818_v13  }
  0x36   : > { %722 = vperm.xlu0 %3241, %v697_v15   ;;  %725 = vperm.xlu1 %3242, %v698_v16   ;;  %v3253_v16 = vld [vmem:[%s4432_s6 + $0x58] sm:$0xff]  }
  0x3a   : > { %848 = vperm.xlu0 %3241, %v819_v17   ;;  %851 = vperm.xlu1 %3242, %v820_v18   ;;  %v3260_v17 = vld [vmem:[%s4432_s6 + $0xa0] sm:$0xff]  }
  0x3e   : > { %728 = vperm.xlu0 %3241, %v699_v19   ;;  %731 = vperm.xlu1 %3242, %v700_v20  }
  0x42   : > { %854 = vperm.xlu0 %3241, %v821_v21   ;;  %857 = vperm.xlu1 %3242, %v822_v22   ;;  %v3255_v22 = vld [vmem:[%s4432_s6 + $0x18] sm:$0xff]  }
  0x46   : > { %734 = vperm.xlu0 %3241, %v701_v23   ;;  %737 = vperm.xlu1 %3242, %v702_v24   ;;  %v3256_v24 = vld [vmem:[%s4432_s6 + $0x60] sm:$0xff]  }
  0x4a   : > { %860 = vperm.xlu0 %3241, %v823_v25   ;;  %863 = vperm.xlu1 %3242, %v824_v26  }
  0x4e   : > { %740 = vperm.xlu0 %3241, %v703_v27   ;;  %743 = vperm.xlu1 %3242, %v704_v28  }
  0x52   : > { %866 = vperm.xlu0 %3241, %v825_v29   ;;  %869 = vperm.xlu1 %3242, %v826_v30   ;;  %v3258_v29 = vld [vmem:[%s4432_s6 + $0x20] sm:$0xff]  }
  0x56   : > { %746 = vperm.xlu0 %3241, %v705_v31   ;;  %749 = vperm.xlu1 %3242, %v706_v32   ;;  %v3259_v31 = vld [vmem:[%s4432_s6 + $0x68] sm:$0xff]  }
  0x5a   : > { %872 = vperm.xlu0 %3241, %v827_v33   ;;  %875 = vperm.xlu1 %3242, %v828_v34  }
  0x5e   : > { %752 = vperm.xlu0 %3241, %v707_v35   ;;  %755 = vperm.xlu1 %3242, %v708_v36   ;;  %v3261_v36 = vld [vmem:[%s4432_s6 + $0x28] sm:$0xff]  }
  0xa1   : > { %v831_v41 = vpop.permute.xlu0 %830  ;;  %v711_v42 = vpop.permute.xlu1 %710 }
  0xa2   : > { %vm877_vm1 = vcmp.eq.s32.totalorder %v3730_v40, %v831_v41  ;;  %vm757_vm2 = vcmp.eq.s32.totalorder %v3730_v40, %v711_v42 }
  0xa3   : > { %v2755_v46 = vsel %vm877_vm1, 1.0, %v3537_v45  ;;  %v2739_v47 = vsel %vm757_vm2, 1.0, %v3537_v45 }
  0xa5   : > { %v834_v43 = vpop.permute.xlu0 %833  ;;  %v714_v44 = vpop.permute.xlu1 %713 }
  0xa6   : > { %vm878_vm3 = vcmp.eq.s32.totalorder %v3730_v40, %v834_v43  ;;  %vm758_vm4 = vcmp.eq.s32.totalorder %v3730_v40, %v714_v44 }
  0xa7   : > { %v2756_v48 = vsel %vm878_vm3, 1.0, %v3537_v45  ;;  %v2740_v49 = vsel %vm758_vm4, 1.0, %v3537_v45 }
  0xa8   : > { %v805_v50 = vpack.c.bf16 %v2740_v49, %v2739_v47  ;;  %v925_v51 = vpack.c.bf16 %v2756_v48, %v2755_v46 }
  0xa9   : > { %v837_v52 = vpop.permute.xlu0 %836  ;;  %v840_v53 = vpop.permute.xlu1 %839 }
  0xaa   : > { %vm879_vm6 = vcmp.eq.s32.totalorder %v3730_v40, %v837_v52  ;;  %vm880_vm7 = vcmp.eq.s32.totalorder %v3730_v40, %v840_v53  ;;  %3058 = vmatprep.mubr.msk.bf16.mxu0 %vm942_vm5, %v805_v50  ;;  %3078 = vmatprep.mubr.msk.bf16.mxu1 %vm942_vm5, %v925_v51 }
  0xab   : > { %v2757_v54 = vsel %vm879_vm6, 1.0, %v3537_v45  ;;  %v2758_v55 = vsel %vm880_vm7, 1.0, %v3537_v45 }
  0xac   : > { %v926_v56 = vpack.c.bf16 %v2758_v55, %v2757_v54 }
  0xad   : > { %v717_v58 = vpop.permute.xlu0 %716  ;;  %v720_v59 = vpop.permute.xlu1 %719 }
  0xae   : > { %vm759_vm8 = vcmp.eq.s32.totalorder %v3730_v40, %v717_v58  ;;  %vm760_vm9 = vcmp.eq.s32.totalorder %v3730_v40, %v720_v59  ;;  %3079 = vmatmul.mubr.msk.bf16.vlgmr.msra.gmra.mrb[0].mxu1 %vm942_vm5, %v926_v56 }
  0xaf   : > { %v2741_v60 = vsel %vm759_vm8, 1.0, %v3537_v45  ;;  %v2742_v61 = vsel %vm760_vm9, 1.0, %v3537_v45  ;;  %3095 = vmatpush3.bf16.msra.mxu1 %v3248_v38 }
  0xb0   : > { %v806_v63 = vpack.c.bf16 %v2742_v61, %v2741_v60  ;;  %3096 = vmatprep.subr.bf16.mxu1 %v3251_v57 }
  0xb1   : > { %v843_v2 = vpop.permute.xlu0 %842  ;;  %v846_v3 = vpop.permute.xlu1 %845 }
  0xb2   : > { %vm881_vm10 = vcmp.eq.s32.totalorder %v3730_v40, %v843_v2  ;;  %vm882_vm11 = vcmp.eq.s32.totalorder %v3730_v40, %v846_v3  ;;  %3059 = vmatmul.mubr.msk.bf16.vlgmr.msra.gmra.mrb[0].mxu0 %vm942_vm5, %v806_v63 }
  0xb3   : > { %v2759_v4 = vsel %vm881_vm10, 1.0, %v3537_v45  ;;  %v2760_v5 = vsel %vm882_vm11, 1.0, %v3537_v45  ;;  %2929 = vmatpush3.bf16.msra.mxu0 %v3246_v62  ;;  %3097 = vmatpush3.bf16.msra.mxu1 %v3251_v57 }
  0xb4   : > { %v927_v7 = vpack.c.bf16 %v2760_v5, %v2759_v4  ;;  %2930 = vmatprep.subr.bf16.mxu0 %v3247_v0  ;;  %3098 = vmatprep.subr.bf16.mxu1 %v3254_v1 }
  0xb5   : > { %v723_v10 = vpop.permute.xlu0 %722  ;;  %v726_v11 = vpop.permute.xlu1 %725 }
  0xb6   : > { %vm761_vm12 = vcmp.eq.s32.totalorder %v3730_v40, %v723_v10  ;;  %vm762_vm13 = vcmp.eq.s32.totalorder %v3730_v40, %v726_v11  ;;  %3082 = vmatprep.mubr.msk.bf16.mxu1 %vm942_vm5, %v927_v7 }
  0xb7   : > { %v2743_v12 = vsel %vm761_vm12, 1.0, %v3537_v45  ;;  %v2744_v13 = vsel %vm762_vm13, 1.0, %v3537_v45  ;;  %2931 = vmatpush3.bf16.msra.mxu0 %v3249_v6  ;;  %3099 = vmatpush3.bf16.msra.mxu1 %v3254_v1 }
  0xb8   : > { %v807_v15 = vpack.c.bf16 %v2744_v13, %v2743_v12  ;;  %2932 = vmatprep.subr.bf16.mxu0 %v3250_v8  ;;  %3100 = vmatprep.subr.bf16.mxu1 %v3257_v9  ;;  %v3262_v12 = vld [vmem:[%s4432_s6 + $0x70] sm:$0xff]   ;;  %v3263_v13 = vld [vmem:[%s4432_s6 + $0xa8] sm:$0xff]  }
  0xb9   : > { %v849_v18 = vpop.permute.xlu0 %848  ;;  %v852_v19 = vpop.permute.xlu1 %851 }
  0xba   : > { %vm883_vm14 = vcmp.eq.s32.totalorder %v3730_v40, %v849_v18  ;;  %vm884_vm15 = vcmp.eq.s32.totalorder %v3730_v40, %v852_v19  ;;  %3062 = vmatprep.mubr.msk.bf16.mxu0 %vm942_vm5, %v807_v15  ;;  %v3267_v15 = vld [vmem:[%s4432_s6 + $0x38] sm:$0xff]   ;;  %v3882_v18 = vld [vmem:[%s3677_s17 + $0x8] sm:$0xff] }
  0xbb   : > { %v2761_v20 = vsel %vm883_vm14, 1.0, %v3537_v45  ;;  %v2762_v21 = vsel %vm884_vm15, 1.0, %v3537_v45  ;;  %2933 = vmatpush3.bf16.msra.mxu0 %v3252_v14  ;;  %3101 = vmatpush3.bf16.msra.mxu1 %v3257_v9  ;;  %v3266_v14 = vld [vmem:[%s4432_s6 + $0xb0] sm:$0xff]  }
  0xbc   : > { %v928_v23 = vpack.c.bf16 %v2762_v21, %v2761_v20  ;;  %2934 = vmatprep.subr.bf16.mxu0 %v3253_v16  ;;  %3102 = vmatprep.subr.bf16.mxu1 %v3260_v17  ;;  %v3268_v16 = vld [vmem:[%s4432_s6 + $0xb8] sm:$0xff]   ;;  %v3887_v20 = vld [vmem:[%s3677_s17 + $0x10] sm:$0xff] }
  0xbd   : > { %v729_v25 = vpop.permute.xlu0 %728  ;;  %v732_v26 = vpop.permute.xlu1 %731  ;;  %v3890_v21 = vld [vmem:[%s3677_s17 + $0x18] sm:$0xff] }
  0xbe   : > { %vm763_vm0 = vcmp.eq.s32.totalorder %v3730_v40, %v729_v25  ;;  %vm764_vm1 = vcmp.eq.s32.totalorder %v3730_v40, %v732_v26  ;;  %3083 = vmatmul.mubr.msk.bf16.gmra.mrb[4].mxu1 %vm942_vm5, %v928_v23  ;;  %v3895_v23 = vld [vmem:[%s3677_s17 + $0x20] sm:$0xff]  ;;  %v3903_v26 = vld [vmem:[%s3677_s17 + $0x30] sm:$0xff] }
  0xbf   : > { %v2745_v27 = vsel %vm763_vm0, 1.0, %v3537_v45  ;;  %v2746_v28 = vsel %vm764_vm1, 1.0, %v3537_v45  ;;  %2935 = vmatpush3.bf16.msra.mxu0 %v3255_v22  ;;  %3103 = vmatpush3.bf16.msra.mxu1 %v3260_v17  ;;  %v3879_v17 = vld [vmem:[%s3677_s17] sm:$0xff]  ;;  %v1206_v22 = vpack.c.bf16 %v3890_v21, %v3887_v20 }
  0xc0   : > { %v808_v30 = vpack.c.bf16 %v2746_v28, %v2745_v27  ;;  %2936 = vmatprep.subr.bf16.mxu0 %v3256_v24  ;;  %3104 = vmatprep.subr.bf16.mxu1 %v3263_v13  ;;  %v1205_v19 = vpack.c.bf16 %v3882_v18, %v3879_v17  ;;  %v3898_v24 = vld [vmem:[%s3677_s17 + $0x28] sm:$0xff]  ;;  %v3906_v27 = vld [vmem:[%s3677_s17 + $0x38] sm:$0xff] }
  0xc1   : > { %v855_v32 = vpop.permute.xlu0 %854  ;;  %v858_v33 = vpop.permute.xlu1 %857  ;;  %v1207_v25 = vpack.c.bf16 %v3898_v24, %v3895_v23  ;;  %v1208_v28 = vpack.c.bf16 %v3906_v27, %v3903_v26 }
  0xc2   : > { %vm885_vm2 = vcmp.eq.s32.totalorder %v3730_v40, %v855_v32  ;;  %vm886_vm3 = vcmp.eq.s32.totalorder %v3730_v40, %v858_v33  ;;  %3063 = vmatmul.mubr.msk.bf16.gmra.mrb[4].mxu0 %vm942_vm5, %v808_v30  ;;  %v3914_v30 = vld [vmem:[%s3677_s17 + $0x48] sm:$0xff]  ;;  %v3919_v32 = vld [vmem:[%s3677_s17 + $0x50] sm:$0xff]  ;;  %v3922_v33 = vld [vmem:[%s3677_s17 + $0x58] sm:$0xff] }
  0xc3   : > { %v2763_v34 = vsel %vm885_vm2, 1.0, %v3537_v45  ;;  %v2764_v35 = vsel %vm886_vm3, 1.0, %v3537_v45  ;;  %2937 = vmatpush3.bf16.msra.mxu0 %v3258_v29  ;;  %3105 = vmatpush3.bf16.msra.mxu1 %v3263_v13  ;;  %v3911_v29 = vld [vmem:[%s3677_s17 + $0x40] sm:$0xff] }
  0xc4   : > { %v929_v37 = vpack.c.bf16 %v2764_v35, %v2763_v34  ;;  %2938 = vmatprep.subr.bf16.mxu0 %v3259_v31  ;;  %3106 = vmatprep.subr.bf16.mxu1 %v3266_v14  ;;  %v1209_v31 = vpack.c.bf16 %v3914_v30, %v3911_v29  ;;  %v1210_v34 = vpack.c.bf16 %v3922_v33, %v3919_v32  ;;  %v3927_v35 = vld [vmem:[%s3677_s17 + $0x60] sm:$0xff] }
  0xc5   : > { %v735_v38 = vpop.permute.xlu0 %734  ;;  %v738_v41 = vpop.permute.xlu1 %737 }
  0xc6   : > { %vm765_vm4 = vcmp.eq.s32.totalorder %v3730_v40, %v735_v38  ;;  %vm766_vm6 = vcmp.eq.s32.totalorder %v3730_v40, %v738_v41  ;;  %3086 = vmatprep.mubr.msk.bf16.mxu1 %vm942_vm5, %v929_v37  ;;  %v3935_v38 = vld [vmem:[%s3677_s17 + $0x70] sm:$0xff]  ;;  %v3938_v41 = vld [vmem:[%s3677_s17 + $0x78] sm:$0xff] }
  0xc7   : > { %v2747_v42 = vsel %vm765_vm4, 1.0, %v3537_v45  ;;  %v2748_v43 = vsel %vm766_vm6, 1.0, %v3537_v45  ;;  %2939 = vmatpush3.bf16.msra.mxu0 %v3261_v36  ;;  %3107 = vmatpush3.bf16.msra.mxu1 %v3266_v14  ;;  %v3930_v36 = vld [vmem:[%s3677_s17 + $0x68] sm:$0xff] }
  0xc8   : > { %v809_v44 = vpack.c.bf16 %v2748_v43, %v2747_v42  ;;  %2940 = vmatprep.subr.bf16.mxu0 %v3262_v12  ;;  %3108 = vmatprep.subr.bf16.mxu1 %v3268_v16  ;;  %v1211_v37 = vpack.c.bf16 %v3930_v36, %v3927_v35  ;;  %v1212_v42 = vpack.c.bf16 %v3938_v41, %v3935_v38 }
  0xc9   : > { %v861_v46 = vpop.permute.xlu0 %860  ;;  %v864_v47 = vpop.permute.xlu1 %863 }
  0xca   : > { %vm887_vm7 = vcmp.eq.s32.totalorder %v3730_v40, %v861_v46  ;;  %vm888_vm8 = vcmp.eq.s32.totalorder %v3730_v40, %v864_v47  ;;  %3066 = vmatprep.mubr.msk.bf16.mxu0 %vm942_vm5, %v809_v44 }
  0xcb   : > { %v2765_v48 = vsel %vm887_vm7, 1.0, %v3537_v45  ;;  %v2766_v49 = vsel %vm888_vm8, 1.0, %v3537_v45  ;;  %3109 = vmatpush3.bf16.msra.mxu1 %v3268_v16 }
  0xcc   : > { %v930_v50 = vpack.c.bf16 %v2766_v49, %v2765_v48 }
  0xcd   : > { %v741_v51 = vpop.permute.xlu0 %740  ;;  %v744_v52 = vpop.permute.xlu1 %743 }
  0xce   : > { %vm767_vm9 = vcmp.eq.s32.totalorder %v3730_v40, %v741_v51  ;;  %vm768_vm10 = vcmp.eq.s32.totalorder %v3730_v40, %v744_v52  ;;  %3087 = vmatmul.mubr.msk.bf16.gmra.mrb[8].mxu1 %vm942_vm5, %v930_v50 }
  0xcf   : > { %v2749_v53 = vsel %vm767_vm9, 1.0, %v3537_v45  ;;  %v2750_v54 = vsel %vm768_vm10, 1.0, %v3537_v45 }
  0xd0   : > { %v810_v55 = vpack.c.bf16 %v2750_v54, %v2749_v53 }
  0xd1   : > { %v867_v56 = vpop.permute.xlu0 %866  ;;  %v870_v57 = vpop.permute.xlu1 %869 }
  0xd2   : > { %vm889_vm11 = vcmp.eq.s32.totalorder %v3730_v40, %v867_v56  ;;  %vm890_vm12 = vcmp.eq.s32.totalorder %v3730_v40, %v870_v57  ;;  %3067 = vmatmul.mubr.msk.bf16.gmra.mrb[8].mxu0 %vm942_vm5, %v810_v55 }
  0xd3   : > { %v2767_v58 = vsel %vm889_vm11, 1.0, %v3537_v45  ;;  %v2768_v59 = vsel %vm890_vm12, 1.0, %v3537_v45 }
  0xd4   : > { %v931_v60 = vpack.c.bf16 %v2768_v59, %v2767_v58 }
  0xd5   : > { %v747_v61 = vpop.permute.xlu0 %746  ;;  %v750_v62 = vpop.permute.xlu1 %749 }
  0xd6   : > { %vm769_vm13 = vcmp.eq.s32.totalorder %v3730_v40, %v747_v61  ;;  %vm770_vm14 = vcmp.eq.s32.totalorder %v3730_v40, %v750_v62  ;;  %3090 = vmatprep.mubr.msk.bf16.mxu1 %vm942_vm5, %v931_v60 }
  0xd7   : > { %v2751_v63 = vsel %vm769_vm13, 1.0, %v3537_v45  ;;  %v2752_v0 = vsel %vm770_vm14, 1.0, %v3537_v45 }
  0xd8   : > { %v811_v1 = vpack.c.bf16 %v2752_v0, %v2751_v63 }
  0xd9   : > { %v873_v2 = vpop.permute.xlu0 %872  ;;  %v876_v3 = vpop.permute.xlu1 %875 }
  0xda   : > { %vm891_vm15 = vcmp.eq.s32.totalorder %v3730_v40, %v873_v2  ;;  %vm892_vm0 = vcmp.eq.s32.totalorder %v3730_v40, %v876_v3  ;;  %3070 = vmatprep.mubr.msk.bf16.mxu0 %vm942_vm5, %v811_v1 }
  0xdb   : > { %v2769_v4 = vsel %vm891_vm15, 1.0, %v3537_v45  ;;  %v2770_v5 = vsel %vm892_vm0, 1.0, %v3537_v45 }
  0xdc   : > { %v932_v6 = vpack.c.bf16 %v2770_v5, %v2769_v4 }
  0xdd   : > { %v753_v7 = vpop.permute.xlu0 %752  ;;  %v756_v8 = vpop.permute.xlu1 %755 }
  0xde   : > { %vm771_vm1 = vcmp.eq.s32.totalorder %v3730_v40, %v753_v7  ;;  %vm772_vm2 = vcmp.eq.s32.totalorder %v3730_v40, %v756_v8  ;;  %3091 = vmatmul.mubr.msk.bf16.gmra.mrb[12].mxu1 %vm942_vm5, %v932_v6  ;;  %v3264_v40 = vld [vmem:[%s4432_s6 + $0x30] sm:$0xff]  }
  0xdf   : > { %v2753_v9 = vsel %vm771_vm1, 1.0, %v3537_v45  ;;  %v2754_v10 = vsel %vm772_vm2, 1.0, %v3537_v45  ;;  %2941 = vmatpush3.bf16.msra.mxu0 %v3264_v40  ;;  %v3265_v45 = vld [vmem:[%s4432_s6 + $0x78] sm:$0xff]   ;;  %3110 = vmatprep.mubr.bf16.mxu1 %v1205_v19 }
  0xe0   : > { %v812_v11 = vpack.c.bf16 %v2754_v10, %v2753_v9  ;;  %2942 = vmatprep.subr.bf16.mxu0 %v3265_v45 }
  0xe2   : > { %3071 = vmatmul.mubr.msk.bf16.gmra.mrb[12].mxu0 %vm942_vm5, %v812_v11 }
  0xe3   : > { %2943 = vmatpush3.bf16.msra.mxu0 %v3267_v15 }
  0xe6   : > { %3111 = vmatmul.mubr.bf16.vlgmr.msra.gmra.mrb[16].mxu1 %v1206_v22 }
  0xe7   : > { %3114 = vmatprep.mubr.bf16.mxu1 %v1207_v25 }
  0xee   : > { %3115 = vmatmul.mubr.bf16.gmra.mrb[20].mxu1 %v1208_v28 }
  0xef   : > { %3118 = vmatprep.mubr.bf16.mxu1 %v1209_v31 }
  0xf6   : > { %3119 = vmatmul.mubr.bf16.gmra.mrb[24].mxu1 %v1210_v34 }
  0xf7   : > { %3122 = vmatprep.mubr.bf16.mxu1 %v1211_v37 }
  0xfe   : > { %3123 = vmatmul.mubr.bf16.gmra.mrb[28].mxu1 %v1212_v42 }
 0x181   : > { %v3080_v43 = vpop.f32.mrb[0].mxu1 }
 0x182   : > { %v1126_v44 = vpop.f32.mrb[1].mxu1 }
 0x183   : > { %v3081_v46 = vpop.f32.mrb[2].mxu1 }
 0x184   : > { %v1198_v47 = vpack.c.bf16 %v3081_v46, %v3080_v43  ;;  %v1129_v48 = vpop.f32.mrb[3].mxu1 }
 0x185   : > { %v1197_v49 = vpack.c.bf16 %v1129_v48, %v1126_v44  ;;  %v3060_v50 = vpop.f32.mrb[0].mxu0 }
 0x186   : > { %v1005_v51 = vpop.f32.mrb[1].mxu0 }
 0x187   : > { %v3061_v52 = vpop.f32.mrb[2].mxu0  ;;  %1444 = vmatprep.mubr.bf16.mxu0 %v1197_v49  ;;  %v3269_v49 = vld [vmem:[%s4434_s8] sm:$0xff]  }
 0x188   : > { %v1190_v53 = vpack.c.bf16 %v3061_v52, %v3060_v50  ;;  %v1008_v54 = vpop.f32.mrb[3].mxu0  ;;  %3126 = vmatprep.subr.bf16.mxu1 %v3269_v49  ;;  %v3270_v50 = vld [vmem:[%s4434_s8 + $0x8] sm:$0xff]  }
 0x189   : > { %v1189_v55 = vpack.c.bf16 %v1008_v54, %v1005_v51  ;;  %3127 = vmatpush3.bf16.msra.mxu1 %v3269_v49  ;;  %v3271_v54 = vld [vmem:[%s4434_s8 + $0x10] sm:$0xff]  }
 0x18a   : > { %3128 = vmatprep.subr.bf16.mxu1 %v3270_v50 }
 0x18b   : > { %1445 = vmatmul.mubr.bf16.vlgmr.msra.gmra.mrb[16].mxu0 %v1189_v55 }
 0x18c   : > { %1452 = vmatprep.mubr.bf16.mxu0 %v1198_v47 }
 0x18d   : > { %3129 = vmatpush3.bf16.msra.mxu1 %v3270_v50 }
 0x18e   : > { %3130 = vmatprep.subr.bf16.mxu1 %v3271_v54 }
 0x191   : > { %v3084_v56 = vpop.f32.mrb[4].mxu1  ;;  %3131 = vmatpush3.bf16.msra.mxu1 %v3271_v54 }
 0x192   : > { %v1142_v57 = vpop.f32.mrb[5].mxu1 }
 0x193   : > { %v3085_v58 = vpop.f32.mrb[6].mxu1  ;;  %1453 = vmatmul.mubr.bf16.gmra.mrb[20].mxu0 %v1190_v53 }
 0x194   : > { %v1200_v59 = vpack.c.bf16 %v3085_v58, %v3084_v56  ;;  %v1145_v60 = vpop.f32.mrb[7].mxu1  ;;  %v3272_v56 = vld [vmem:[%s4434_s8 + $0x18] sm:$0xff]   ;;  %v3274_v58 = vld [vmem:[%s4434_s8 + $0x28] sm:$0xff]  }
 0x195   : > { %v1199_v61 = vpack.c.bf16 %v1145_v60, %v1142_v57  ;;  %v3064_v62 = vpop.f32.mrb[4].mxu0  ;;  %3132 = vmatprep.subr.bf16.mxu1 %v3272_v56  ;;  %v3273_v57 = vld [vmem:[%s4434_s8 + $0x20] sm:$0xff]  }
 0x196   : > { %v1021_v63 = vpop.f32.mrb[5].mxu0  ;;  %3133 = vmatpush3.bf16.msra.mxu1 %v3272_v56 }
 0x197   : > { %v3065_v0 = vpop.f32.mrb[6].mxu0  ;;  %1460 = vmatprep.mubr.bf16.mxu0 %v1199_v61  ;;  %3134 = vmatprep.subr.bf16.mxu1 %v3273_v57 }
 0x198   : > { %v1192_v1 = vpack.c.bf16 %v3065_v0, %v3064_v62  ;;  %v1024_v2 = vpop.f32.mrb[7].mxu0  ;;  %v3275_v62 = vld [vmem:[%s4434_s8 + $0x30] sm:$0xff]   ;;  %v3276_v0 = vld [vmem:[%s4434_s8 + $0x38] sm:$0xff]  }
 0x199   : > { %v1191_v3 = vpack.c.bf16 %v1024_v2, %v1021_v63 }
 0x19a   : > { %3135 = vmatpush3.bf16.msra.mxu1 %v3273_v57 }
 0x19b   : > { %1461 = vmatmul.mubr.bf16.gmra.mrb[24].mxu0 %v1191_v3  ;;  %3136 = vmatprep.subr.bf16.mxu1 %v3274_v58 }
 0x19c   : > { %1468 = vmatprep.mubr.bf16.mxu0 %v1200_v59 }
 0x19e   : > { %3137 = vmatpush3.bf16.msra.mxu1 %v3274_v58 }
 0x19f   : > { %3138 = vmatprep.subr.bf16.mxu1 %v3275_v62 }
 0x1a1   : > { %v3088_v4 = vpop.f32.mrb[8].mxu1 }
 0x1a2   : > { %v1158_v5 = vpop.f32.mrb[9].mxu1  ;;  %3139 = vmatpush3.bf16.msra.mxu1 %v3275_v62 }
 0x1a3   : > { %v3089_v6 = vpop.f32.mrb[10].mxu1  ;;  %1469 = vmatmul.mubr.bf16.gmra.mrb[28].mxu0 %v1192_v1  ;;  %3140 = vmatprep.subr.bf16.mxu1 %v3276_v0 }
 0x1a4   : > { %v1202_v7 = vpack.c.bf16 %v3089_v6, %v3088_v4  ;;  %v1161_v8 = vpop.f32.mrb[11].mxu1 }
 0x1a5   : > { %v1201_v9 = vpack.c.bf16 %v1161_v8, %v1158_v5  ;;  %v3068_v10 = vpop.f32.mrb[8].mxu0 }
 0x1a6   : > { %v1037_v11 = vpop.f32.mrb[9].mxu0  ;;  %3141 = vmatpush3.bf16.msra.mxu1 %v3276_v0 }
 0x1a7   : > { %v3069_v12 = vpop.f32.mrb[10].mxu0  ;;  %1476 = vmatprep.mubr.bf16.mxu0 %v1201_v9 }
 0x1a8   : > { %v1194_v13 = vpack.c.bf16 %v3069_v12, %v3068_v10  ;;  %v1040_v40 = vpop.f32.mrb[11].mxu0 }
 0x1a9   : > { %v1193_v45 = vpack.c.bf16 %v1040_v40, %v1037_v11 }
 0x1ab   : > { %1477 = vmatmul.mubr.bf16.gmra.mrb[32].mxu0 %v1193_v45 }
 0x1ac   : > { %1484 = vmatprep.mubr.bf16.mxu0 %v1202_v7  ;;  %v3995_v7 = vld [vmem:[%s4433_s7] ss:$0 sm:$0xff] }
 0x1b1   : > { %v3092_v14 = vpop.f32.mrb[12].mxu1 }
 0x1b2   : > { %v1174_v15 = vpop.f32.mrb[13].mxu1 }
 0x1b3   : > { %v3093_v16 = vpop.f32.mrb[14].mxu1  ;;  %1485 = vmatmul.mubr.bf16.gmra.mrb[36].mxu0 %v1194_v13 }
 0x1b4   : > { %v1204_v19 = vpack.c.bf16 %v3093_v16, %v3092_v14  ;;  %v1177_v22 = vpop.f32.mrb[15].mxu1 }
 0x1b5   : > { %v1203_v25 = vpack.c.bf16 %v1177_v22, %v1174_v15  ;;  %v3072_v28 = vpop.f32.mrb[12].mxu0 }
 0x1b6   : > { %v1053_v31 = vpop.f32.mrb[13].mxu0 }
 0x1b7   : > { %v3073_v34 = vpop.f32.mrb[14].mxu0  ;;  %1492 = vmatprep.mubr.bf16.mxu0 %v1203_v25 }
 0x1b8   : > { %v1196_v37 = vpack.c.bf16 %v3073_v34, %v3072_v28  ;;  %v1056_v42 = vpop.f32.mrb[15].mxu0 }
 0x1b9   : > { %v1195_v43 = vpack.c.bf16 %v1056_v42, %v1053_v31  ;;  %v3112_v44 = vpop.f32.mrb[16].mxu1 }
 0x1ba   : > { %v1543_v46 = vpop.f32.mrb[17].mxu1 }
 0x1bb   : > { %1493 = vmatmul.mubr.bf16.gmra.mrb[40].mxu0 %v1195_v43  ;;  %v3942_v47 = vpop.f32.mrb[18].mxu1 }
 0x1bc   : > { %1500 = vmatprep.mubr.bf16.mxu0 %v1204_v19  ;;  %v1546_v48 = vpop.f32.mrb[19].mxu1 }
 0x1c1   : > { %v3950_v51 = vpop.f32.mrb[20].mxu1 }
 0x1c2   : > { %v3952_v52 = vpop.f32.mrb[21].mxu1 }
 0x1c3   : > { %1501 = vmatmul.mubr.bf16.gmra.mrb[44].mxu0 %v1196_v37  ;;  %v3954_v53 = vpop.f32.mrb[22].mxu1 }
 0x1c4   : > { %v3959_v55 = vpop.f32.mrb[23].mxu1 }
 0x1c9   : > { %v3970_v59 = vpop.f32.mrb[24].mxu1 }
 0x1ca   : > { %v3972_v60 = vpop.f32.mrb[25].mxu1 }
 0x1cb   : > { %v3974_v61 = vpop.f32.mrb[26].mxu1 }
 0x1cc   : > { %v3979_v63 = vpop.f32.mrb[27].mxu1 }
 0x1d1   : > { %v3984_v1 = vpop.f32.mrb[28].mxu1 }
 0x1d2   : > { %v3986_v2 = vpop.f32.mrb[29].mxu1 }
 0x1d3   : > { %v3988_v3 = vpop.f32.mrb[30].mxu1 }
 0x1d4   : > { %v3990_v4 = vpop.f32.mrb[31].mxu1 }
 0x25e   : > { %v2944_v5 = vpop.f32.mrb[16].mxu0 }
 0x25f   : > { %v2945_v6 = vpop.f32.mrb[17].mxu0 }
 0x260   : > { %v2946_v8 = vadd.f32 %v2945_v6, %v2944_v5  ;;  %v2947_v9 = vpop.f32.mrb[18].mxu0 }
 0x261   : > { %v2948_v10 = vpop.f32.mrb[19].mxu0 }
 0x262   : > { %v2949_v11 = vadd.f32 %v2948_v10, %v2947_v9  ;;  %v1447_v12 = vadd.f32 %v2946_v8, %v3995_v7 }
 0x264   : > { %v3998_v13 = vadd.f32 %v1543_v46, %v1447_v12  ;;  %v1450_v40 = vadd.f32 %v2949_v11, %v3995_v7 }
 0x266   : > { %v2814_v45 = vmul.f32 -1.442695, %v3998_v13  ;;  %v4002_v14 = vadd.f32 %v1546_v48, %v1450_v40  ;;  %v2950_v15 = vpop.f32.mrb[20].mxu0 }
 0x267   : > { %v2951_v16 = vpop.f32.mrb[21].mxu0 }
 0x268   : > { %3277 = vpow2.f32 %v2814_v45  ;;  %v2815_v19 = vmul.f32 -1.442695, %v4002_v14  ;;  %v2952_v22 = vadd.f32 %v2951_v16, %v2950_v15  ;;  %v2953_v25 = vpop.f32.mrb[22].mxu0 }
 0x269   : > { %v2954_v28 = vpop.f32.mrb[23].mxu0 }
 0x26a   : > { %3279 = vpow2.f32 %v2815_v19  ;;  %v1455_v31 = vadd.f32 %v2952_v22, %v3995_v7  ;;  %v2955_v34 = vadd.f32 %v2954_v28, %v2953_v25 }
 0x26c   : > { %v4006_v37 = vadd.f32 %v3112_v44, %v1455_v31  ;;  %v1458_v42 = vadd.f32 %v2955_v34, %v3995_v7 }
 0x26e   : > { %v2816_v43 = vmul.f32 -1.442695, %v4006_v37  ;;  %v4011_v46 = vadd.f32 %v3942_v47, %v1458_v42  ;;  %v2956_v48 = vpop.f32.mrb[24].mxu0 }
 0x26f   : > { %v2957_v49 = vpop.f32.mrb[25].mxu0 }
 0x270   : > { %3281 = vpow2.f32 %v2816_v43  ;;  %v2817_v50 = vmul.f32 -1.442695, %v4011_v46  ;;  %v2958_v54 = vadd.f32 %v2957_v49, %v2956_v48  ;;  %v2959_v56 = vpop.f32.mrb[26].mxu0 }
 0x271   : > { %v2960_v57 = vpop.f32.mrb[27].mxu0 }
 0x272   : > { %v3278_v58 = vpop.eup %3277  ;;  %3283 = vpow2.f32 %v2817_v50  ;;  %v2961_v62 = vadd.f32 %v2960_v57, %v2959_v56  ;;  %v1463_v44 = vadd.f32 %v2958_v54, %v3995_v7 }
 0x273   : > { %v1654_v0 = vadd.f32 1.0, %v3278_v58 }
 0x274   : > { %v3280_v5 = vpop.eup %3279  ;;  %v4016_v6 = vadd.f32 %v3952_v52, %v1463_v44  ;;  %v1466_v47 = vadd.f32 %v2961_v62, %v3995_v7 }
 0x275   : > { %3285 = vrcp.f32 %v1654_v0  ;;  %v1655_v8 = vadd.f32 1.0, %v3280_v5 }
 0x276   : > { %v2818_v9 = vmul.f32 -1.442695, %v4016_v6  ;;  %v4021_v10 = vadd.f32 %v3959_v55, %v1466_v47  ;;  %v2962_v11 = vpop.f32.mrb[28].mxu0 }
 0x277   : > { %3287 = vrcp.f32 %v1655_v8  ;;  %v2963_v12 = vpop.f32.mrb[29].mxu0 }
 0x278   : > { %3289 = vpow2.f32 %v2818_v9  ;;  %v2819_v40 = vmul.f32 -1.442695, %v4021_v10  ;;  %v2964_v45 = vadd.f32 %v2963_v12, %v2962_v11  ;;  %v2965_v15 = vpop.f32.mrb[30].mxu0 }
 0x279   : > { %v2966_v16 = vpop.f32.mrb[31].mxu0 }
 0x27a   : > { %v3282_v52 = vpop.eup %3281  ;;  %3291 = vpow2.f32 %v2819_v40  ;;  %v1471_v19 = vadd.f32 %v2964_v45, %v3995_v7  ;;  %v2967_v22 = vadd.f32 %v2966_v16, %v2965_v15 }
 0x27b   : > { %v1656_v25 = vadd.f32 1.0, %v3282_v52 }
 0x27c   : > { %v3284_v28 = vpop.eup %3283  ;;  %v4026_v31 = vadd.f32 %v3950_v51, %v1471_v19  ;;  %v1474_v55 = vadd.f32 %v2967_v22, %v3995_v7 }
 0x27d   : > { %3293 = vrcp.f32 %v1656_v25  ;;  %v1657_v34 = vadd.f32 1.0, %v3284_v28 }
 0x27e   : > { %v2820_v42 = vmul.f32 -1.442695, %v4026_v31  ;;  %v4031_v43 = vadd.f32 %v3954_v53, %v1474_v55  ;;  %v2968_v48 = vpop.f32.mrb[32].mxu0 }
 0x27f   : > { %v3286_v49 = vpop.eup %3285  ;;  %3295 = vrcp.f32 %v1657_v34  ;;  %v2969_v50 = vpop.f32.mrb[33].mxu0 }
 0x280   : > { %3297 = vpow2.f32 %v2820_v42  ;;  %v2821_v54 = vmul.f32 -1.442695, %v4031_v43  ;;  %v2970_v56 = vadd.f32 %v2969_v50, %v2968_v48  ;;  %v2971_v57 = vpop.f32.mrb[34].mxu0  ;;  %v1702_v58 = vmul.f32 %v3286_v49, %v3998_v13 }
 0x281   : > { %v3288_v51 = vpop.eup %3287  ;;  %v2972_v62 = vpop.f32.mrb[35].mxu0 }
 0x282   : > { %v3290_v44 = vpop.eup %3289  ;;  %v1703_v0 = vmul.f32 %v3288_v51, %v4002_v14  ;;  %3299 = vpow2.f32 %v2821_v54  ;;  %v2973_v5 = vadd.f32 %v2972_v62, %v2971_v57  ;;  %v1479_v53 = vadd.f32 %v2970_v56, %v3995_v7 }
 0x283   : > { %v1658_v47 = vadd.f32 1.0, %v3290_v44 }
 0x284   : > { %v3292_v8 = vpop.eup %3291  ;;  %v4038_v9 = vadd.f32 %v3972_v60, %v1479_v53  ;;  %v1482_v11 = vadd.f32 %v2973_v5, %v3995_v7  ;;  %v1718_v12 = vpack.c.bf16 %v1703_v0, %v1702_v58 }
 0x285   : > { %3301 = vrcp.f32 %v1658_v47  ;;  %v1659_v40 = vadd.f32 1.0, %v3292_v8 }
 0x286   : > { %v2822_v13 = vmul.f32 -1.442695, %v4038_v9  ;;  %v4043_v45 = vadd.f32 %v3979_v63, %v1482_v11  ;;  %v2974_v14 = vpop.f32.mrb[36].mxu0  ;;  %3142 = vmatprep.mubr.bf16.mxu1 %v1718_v12 }
 0x287   : > { %v3294_v15 = vpop.eup %3293  ;;  %3303 = vrcp.f32 %v1659_v40  ;;  %v2975_v16 = vpop.f32.mrb[37].mxu0 }
 0x288   : > { %3305 = vpow2.f32 %v2822_v13  ;;  %v2823_v52 = vmul.f32 -1.442695, %v4043_v45  ;;  %v2976_v60 = vadd.f32 %v2975_v16, %v2974_v14  ;;  %v2977_v19 = vpop.f32.mrb[38].mxu0  ;;  %v1704_v25 = vmul.f32 %v3294_v15, %v4006_v37 }
 0x289   : > { %v3296_v22 = vpop.eup %3295  ;;  %v2978_v28 = vpop.f32.mrb[39].mxu0 }
 0x28a   : > { %v3298_v55 = vpop.eup %3297  ;;  %v1705_v34 = vmul.f32 %v3296_v22, %v4011_v46  ;;  %3307 = vpow2.f32 %v2823_v52  ;;  %v1487_v63 = vadd.f32 %v2976_v60, %v3995_v7  ;;  %v2979_v42 = vadd.f32 %v2978_v28, %v2977_v19 }
 0x28b   : > { %v1660_v48 = vadd.f32 1.0, %v3298_v55 }
 0x28c   : > { %v3300_v49 = vpop.eup %3299  ;;  %v1719_v50 = vpack.c.bf16 %v1705_v34, %v1704_v25  ;;  %v4050_v54 = vadd.f32 %v3970_v59, %v1487_v63  ;;  %v1490_v56 = vadd.f32 %v2979_v42, %v3995_v7 }
 0x28d   : > { %3309 = vrcp.f32 %v1660_v48  ;;  %v1661_v57 = vadd.f32 1.0, %v3300_v49 }
 0x28e   : > { %v2824_v37 = vmul.f32 -1.442695, %v4050_v54  ;;  %v4055_v51 = vadd.f32 %v3974_v61, %v1490_v56  ;;  %v2980_v46 = vpop.f32.mrb[40].mxu0  ;;  %3143 = vmatmul.mubr.bf16.vlgmr.msra.gmra.mrb[32].mxu1 %v1719_v50 }
 0x28f   : > { %v3302_v58 = vpop.eup %3301  ;;  %3311 = vrcp.f32 %v1661_v57  ;;  %v2981_v62 = vpop.f32.mrb[41].mxu0 }
 0x290   : > { %3313 = vpow2.f32 %v2824_v37  ;;  %v2825_v44 = vmul.f32 -1.442695, %v4055_v51  ;;  %v2982_v0 = vadd.f32 %v2981_v62, %v2980_v46  ;;  %v2983_v59 = vpop.f32.mrb[42].mxu0  ;;  %v1706_v53 = vmul.f32 %v3302_v58, %v4016_v6 }
 0x291   : > { %v3304_v5 = vpop.eup %3303  ;;  %v2984_v47 = vpop.f32.mrb[43].mxu0 }
 0x292   : > { %v3306_v8 = vpop.eup %3305  ;;  %v1707_v11 = vmul.f32 %v3304_v5, %v4021_v10  ;;  %3315 = vpow2.f32 %v2825_v44  ;;  %v2985_v61 = vadd.f32 %v2984_v47, %v2983_v59  ;;  %v1495_v12 = vadd.f32 %v2982_v0, %v3995_v7 }
 0x293   : > { %v1662_v40 = vadd.f32 1.0, %v3306_v8 }
 0x294   : > { %v3308_v13 = vpop.eup %3307  ;;  %v4062_v14 = vadd.f32 %v3986_v2, %v1495_v12  ;;  %v1498_v15 = vadd.f32 %v2985_v61, %v3995_v7  ;;  %v1720_v16 = vpack.c.bf16 %v1707_v11, %v1706_v53 }
 0x295   : > { %3317 = vrcp.f32 %v1662_v40  ;;  %v1663_v52 = vadd.f32 1.0, %v3308_v13 }
 0x296   : > { %v2826_v6 = vmul.f32 -1.442695, %v4062_v14  ;;  %v1595_v60 = vadd.f32 %v3990_v4, %v1498_v15  ;;  %v2986_v19 = vpop.f32.mrb[44].mxu0  ;;  %3146 = vmatprep.mubr.bf16.mxu1 %v1720_v16 }
 0x297   : > { %v3310_v10 = vpop.eup %3309  ;;  %3319 = vrcp.f32 %v1663_v52  ;;  %v2987_v22 = vpop.f32.mrb[45].mxu0 }
 0x298   : > { %3321 = vpow2.f32 %v2826_v6  ;;  %v2827_v25 = vmul.f32 -1.442695, %v1595_v60  ;;  %v2988_v28 = vadd.f32 %v2987_v22, %v2986_v19  ;;  %v2989_v55 = vpop.f32.mrb[46].mxu0  ;;  %v1708_v63 = vmul.f32 %v3310_v10, %v4026_v31 }
 0x299   : > { %v3312_v2 = vpop.eup %3311  ;;  %v2990_v34 = vpop.f32.mrb[47].mxu0 }
 0x29a   : > { %v3314_v42 = vpop.eup %3313  ;;  %3323 = vpow2.f32 %v2827_v25  ;;  %v1503_v48 = vadd.f32 %v2988_v28, %v3995_v7  ;;  %v2991_v49 = vadd.f32 %v2990_v34, %v2989_v55  ;;  %v1709_v4 = vmul.f32 %v3312_v2, %v4031_v43 }
 0x29b   : > { %v1664_v50 = vadd.f32 1.0, %v3314_v42 }
 0x29c   : > { %v3316_v56 = vpop.eup %3315  ;;  %v1600_v57 = vadd.f32 %v3984_v1, %v1503_v48  ;;  %v1506_v37 = vadd.f32 %v2991_v49, %v3995_v7  ;;  %v1721_v46 = vpack.c.bf16 %v1709_v4, %v1708_v63 }
 0x29d   : > { %3325 = vrcp.f32 %v1664_v50  ;;  %v1665_v58 = vadd.f32 1.0, %v3316_v56 }
 0x29e   : > { %v2828_v62 = vmul.f32 -1.442695, %v1600_v57  ;;  %v1603_v44 = vadd.f32 %v3988_v3, %v1506_v37  ;;  %3147 = vmatmul.mubr.bf16.gmra.mrb[36].mxu1 %v1721_v46 }
 0x29f   : > { %v3318_v31 = vpop.eup %3317  ;;  %3327 = vrcp.f32 %v1665_v58 }
 0x2a0   : > { %3329 = vpow2.f32 %v2828_v62  ;;  %v2829_v0 = vmul.f32 -1.442695, %v1603_v44  ;;  %v1710_v43 = vmul.f32 %v3318_v31, %v4038_v9 }
 0x2a1   : > { %v3320_v59 = vpop.eup %3319 }
 0x2a2   : > { %v3322_v5 = vpop.eup %3321  ;;  %v1711_v53 = vmul.f32 %v3320_v59, %v4043_v45  ;;  %3331 = vpow2.f32 %v2829_v0 }
 0x2a3   : > { %v1666_v1 = vadd.f32 1.0, %v3322_v5 }
 0x2a4   : > { %v3324_v7 = vpop.eup %3323  ;;  %v1722_v47 = vpack.c.bf16 %v1711_v53, %v1710_v43 }
 0x2a5   : > { %3333 = vrcp.f32 %v1666_v1  ;;  %v1667_v8 = vadd.f32 1.0, %v3324_v7 }
 0x2a6   : > { %3150 = vmatprep.mubr.bf16.mxu1 %v1722_v47 }
 0x2a7   : > { %v3326_v11 = vpop.eup %3325  ;;  %3335 = vrcp.f32 %v1667_v8 }
 0x2a8   : > { %v1712_v12 = vmul.f32 %v3326_v11, %v4050_v54 }
 0x2a9   : > { %v3328_v3 = vpop.eup %3327 }
 0x2aa   : > { %v3330_v61 = vpop.eup %3329  ;;  %v1713_v40 = vmul.f32 %v3328_v3, %v4055_v51  ;;  %v4081_v51 = vld [vmem:[%s4435_s9] ss:$0 sm:$0xff] }
 0x2ab   : > { %v1668_v13 = vadd.f32 1.0, %v3330_v61 }
 0x2ac   : > { %v3332_v15 = vpop.eup %3331  ;;  %v1723_v9 = vpack.c.bf16 %v1713_v40, %v1712_v12 }
 0x2ad   : > { %3337 = vrcp.f32 %v1668_v13  ;;  %v1669_v45 = vadd.f32 1.0, %v3332_v15 }
 0x2ae   : > { %3151 = vmatmul.mubr.bf16.gmra.mrb[40].mxu1 %v1723_v9 }
 0x2af   : > { %v3334_v16 = vpop.eup %3333  ;;  %3339 = vrcp.f32 %v1669_v45  ;;  %v4108_v45 = vld [vmem:[%s4436_s10] ss:$0 sm:$0xff] }
 0x2b0   : > { %v1714_v6 = vmul.f32 %v3334_v16, %v4062_v14 }
 0x2b1   : > { %v3336_v52 = vpop.eup %3335 }
 0x2b2   : > { %v1715_v19 = vmul.f32 %v3336_v52, %v1595_v60 }
 0x2b4   : > { %v1724_v10 = vpack.c.bf16 %v1715_v19, %v1714_v6 }
 0x2b6   : > { %3154 = vmatprep.mubr.bf16.mxu1 %v1724_v10 }
 0x2b7   : > { %v3338_v22 = vpop.eup %3337 }
 0x2b8   : > { %v1716_v28 = vmul.f32 %v3338_v22, %v1600_v57 }
 0x2b9   : > { %v3340_v25 = vpop.eup %3339 }
 0x2ba   : > { %v1717_v54 = vmul.f32 %v3340_v25, %v1603_v44 }
 0x2bc   : > { %v1725_v55 = vpack.c.bf16 %v1717_v54, %v1716_v28 }
 0x2be   : > { %3155 = vmatmul.mubr.bf16.gmra.mrb[44].mxu1 %v1725_v55 }
 0x361   : > { %v3144_v2 = vpop.f32.mrb[32].mxu1 }
 0x362   : > { %v1840_v34 = vadd.f32 %v3144_v2, %v4081_v51  ;;  %v1831_v63 = vpop.f32.mrb[33].mxu1 }
 0x363   : > { %v1832_v14 = vadd.f32 %v4081_v51, %v1831_v63  ;;  %v3145_v60 = vpop.f32.mrb[34].mxu1 }
 0x364   : > { %v2841_v42 = vmul.f32 -1.442695, %v1840_v34  ;;  %v1843_v48 = vadd.f32 %v3145_v60, %v4081_v51  ;;  %v1834_v49 = vpop.f32.mrb[35].mxu1 }
 0x365   : > { %v2839_v4 = vmul.f32 -1.442695, %v1832_v14  ;;  %v1835_v50 = vadd.f32 %v4081_v51, %v1834_v49 }
 0x366   : > { %3341 = vpow2.f32 %v2841_v42  ;;  %v2842_v56 = vmul.f32 -1.442695, %v1843_v48 }
 0x367   : > { %3343 = vpow2.f32 %v2839_v4  ;;  %v2840_v57 = vmul.f32 -1.442695, %v1835_v50 }
 0x368   : > { %3345 = vpow2.f32 %v2842_v56 }
 0x369   : > { %3347 = vpow2.f32 %v2840_v57 }
 0x370   : > { %v3342_v37 = vpop.eup %3341 }
 0x371   : > { %v3344_v46 = vpop.eup %3343  ;;  %v1944_v58 = vadd.f32 1.0, %v3342_v37  ;;  %v3148_v62 = vpop.f32.mrb[36].mxu1 }
 0x372   : > { %v3346_v44 = vpop.eup %3345  ;;  %v1942_v31 = vadd.f32 1.0, %v3344_v46  ;;  %v4088_v0 = vadd.f32 %v3148_v62, %v4081_v51  ;;  %v1847_v59 = vpop.f32.mrb[37].mxu1 }
 0x373   : > { %v3348_v5 = vpop.eup %3347  ;;  %3349 = vrcp.f32 %v1944_v58  ;;  %v1945_v43 = vadd.f32 1.0, %v3346_v44  ;;  %v4091_v53 = vadd.f32 %v4081_v51, %v1847_v59  ;;  %v3149_v1 = vpop.f32.mrb[38].mxu1 }
 0x374   : > { %3351 = vrcp.f32 %v1942_v31  ;;  %v1943_v7 = vadd.f32 1.0, %v3348_v5  ;;  %v2845_v47 = vmul.f32 -1.442695, %v4088_v0  ;;  %v4095_v8 = vadd.f32 %v3149_v1, %v4081_v51  ;;  %v1850_v11 = vpop.f32.mrb[39].mxu1 }
 0x375   : > { %3353 = vrcp.f32 %v1945_v43  ;;  %v2843_v3 = vmul.f32 -1.442695, %v4091_v53  ;;  %v4099_v61 = vadd.f32 %v4081_v51, %v1850_v11 }
 0x376   : > { %3355 = vrcp.f32 %v1943_v7  ;;  %v2846_v12 = vmul.f32 -1.442695, %v4095_v8 }
 0x377   : > { %3357 = vpow2.f32 %v2845_v47  ;;  %v2844_v40 = vmul.f32 -1.442695, %v4099_v61 }
 0x378   : > { %3359 = vpow2.f32 %v2843_v3 }
 0x379   : > { %3361 = vpow2.f32 %v2846_v12 }
 0x37a   : > { %3363 = vpow2.f32 %v2844_v40 }
 0x37d   : > { %v3350_v13 = vpop.eup %3349 }
 0x37e   : > { %v3352_v15 = vpop.eup %3351  ;;  %v4103_v9 = vmul.f32 %v3350_v13, %v1840_v34 }
 0x37f   : > { %v3354_v16 = vpop.eup %3353  ;;  %v4110_v52 = vmul.f32 %v3352_v15, %v1832_v14 }
 0x380   : > { %v3356_v6 = vpop.eup %3355  ;;  %v2008_v19 = vadd.f32 %v4103_v9, %v3887_v20  ;;  %v4114_v10 = vmul.f32 %v3354_v16, %v1843_v48 }
 0x381   : > { %v3358_v22 = vpop.eup %3357  ;;  %v2006_v25 = vadd.f32 %v4110_v52, %v3879_v17  ;;  %v4118_v28 = vmul.f32 %v3356_v6, %v1835_v50  ;;  %v3152_v54 = vpop.f32.mrb[40].mxu1  ;;  %v2045_v55 = vmul.f32 %v4108_v45, %v4110_v52  ;;  %v2047_v17 = vmul.f32 %v4108_v45, %v4103_v9 }
 0x382   : > { %v3360_v2 = vpop.eup %3359  ;;  %2024 = vst [vmem:[%s3682_s22 + $0x10] sm:$0xff] %v2008_v19  ;;  %v2009_v34 = vadd.f32 %v4114_v10, %v3890_v21  ;;  %v1948_v63 = vadd.f32 1.0, %v3358_v22  ;;  %v4126_v20 = vadd.f32 %v3152_v54, %v4081_v51  ;;  %v1863_v14 = vpop.f32.mrb[41].mxu1  ;;  %v2048_v59 = vmul.f32 %v4108_v45, %v4114_v10 }
 0x383   : > { %v3362_v60 = vpop.eup %3361  ;;  %2022 = vst [vmem:[%s3682_s22] sm:$0xff] %v2006_v25  ;;  %v2007_v42 = vadd.f32 %v4118_v28, %v3882_v18  ;;  %v1946_v48 = vadd.f32 1.0, %v3360_v2  ;;  %v4134_v49 = vadd.f32 %v4081_v51, %v1863_v14  ;;  %v3153_v4 = vpop.f32.mrb[42].mxu1  ;;  %2061 = vadd.xlane.f32.xlu0 %v2045_v55  ;;  %v2046_v21 = vmul.f32 %v4108_v45, %v4118_v28 }
 0x384   : > { %v3364_v50 = vpop.eup %3363  ;;  %2025 = vst [vmem:[%s3682_s22 + $0x18] sm:$0xff] %v2009_v34  ;;  %3365 = vrcp.f32 %v1948_v63  ;;  %v1949_v56 = vadd.f32 1.0, %v3362_v60  ;;  %v2849_v57 = vmul.f32 -1.442695, %v4126_v20  ;;  %v4141_v37 = vadd.f32 %v3153_v4, %v4081_v51  ;;  %v1866_v46 = vpop.f32.mrb[43].mxu1 }
 0x385   : > { %2023 = vst [vmem:[%s3682_s22 + $0x8] sm:$0xff] %v2007_v42  ;;  %3367 = vrcp.f32 %v1946_v48  ;;  %v1947_v18 = vadd.f32 1.0, %v3364_v50  ;;  %v2847_v58 = vmul.f32 -1.442695, %v4134_v49  ;;  %v4146_v62 = vadd.f32 %v4081_v51, %v1866_v46  ;;  %2063 = vadd.xlane.f32.xlu1 %v2046_v21 }
 0x386   : > { %3369 = vrcp.f32 %v1949_v56  ;;  %v2850_v44 = vmul.f32 -1.442695, %v4141_v37 }
 0x387   : > { %3371 = vrcp.f32 %v1947_v18  ;;  %v2848_v31 = vmul.f32 -1.442695, %v4146_v62  ;;  %2065 = vadd.xlane.f32.xlu0 %v2047_v17 }
 0x388   : > { %3373 = vpow2.f32 %v2849_v57 }
 0x389   : > { %3375 = vpow2.f32 %v2847_v58 }
 0x38a   : > { %3377 = vpow2.f32 %v2850_v44 }
 0x38b   : > { %3379 = vpow2.f32 %v2848_v31  ;;  %2067 = vadd.xlane.f32.xlu0 %v2048_v59 }
 0x38e   : > { %v3366_v5 = vpop.eup %3365 }
 0x38f   : > { %v3368_v43 = vpop.eup %3367  ;;  %v4153_v1 = vmul.f32 %v3366_v5, %v4088_v0 }
 0x390   : > { %v3370_v7 = vpop.eup %3369  ;;  %v4156_v47 = vmul.f32 %v3368_v43, %v4091_v53 }
 0x391   : > { %v3372_v11 = vpop.eup %3371  ;;  %v2012_v3 = vadd.f32 %v4153_v1, %v3903_v26  ;;  %v4161_v12 = vmul.f32 %v3370_v7, %v4095_v8  ;;  %v3156_v40 = vpop.f32.mrb[44].mxu1 }
 0x392   : > { %v3374_v13 = vpop.eup %3373  ;;  %v2010_v15 = vadd.f32 %v4156_v47, %v3895_v23  ;;  %v4166_v0 = vmul.f32 %v3372_v11, %v4099_v61  ;;  %v4169_v16 = vadd.f32 %v3156_v40, %v4081_v51  ;;  %v1879_v53 = vpop.f32.mrb[45].mxu1  ;;  %v2049_v6 = vmul.f32 %v4108_v45, %v4156_v47 }
 0x393   : > { %v3376_v26 = vpop.eup %3375  ;;  %2028 = vst [vmem:[%s3682_s22 + $0x30] sm:$0xff] %v2012_v3  ;;  %v2013_v8 = vadd.f32 %v4161_v12, %v3906_v27  ;;  %v1952_v19 = vadd.f32 1.0, %v3374_v13  ;;  %v4177_v22 = vadd.f32 %v4081_v51, %v1879_v53  ;;  %v3157_v23 = vpop.f32.mrb[46].mxu1  ;;  %v2051_v27 = vmul.f32 %v4108_v45, %v4153_v1 }
 0x394   : > { %v3378_v61 = vpop.eup %3377  ;;  %2026 = vst [vmem:[%s3682_s22 + $0x20] sm:$0xff] %v2010_v15  ;;  %v2011_v25 = vadd.f32 %v4166_v0, %v3898_v24  ;;  %v1950_v54 = vadd.f32 1.0, %v3376_v26  ;;  %2069 = vadd.xlane.f32.xlu1 %v2049_v6  ;;  %v4183_v55 = vadd.f32 %v3157_v23, %v4081_v51  ;;  %v1882_v2 = vpop.f32.mrb[47].mxu1  ;;  %v2853_v14 = vmul.f32 -1.442695, %v4169_v16 }
 0x395   : > { %v3380_v34 = vpop.eup %3379  ;;  %2029 = vst [vmem:[%s3682_s22 + $0x38] sm:$0xff] %v2013_v8  ;;  %3381 = vrcp.f32 %v1952_v19  ;;  %v1953_v63 = vadd.f32 1.0, %v3378_v61  ;;  %v4190_v17 = vadd.f32 %v4081_v51, %v1882_v2  ;;  %v2851_v60 = vmul.f32 -1.442695, %v4177_v22 }
 0x396   : > { %2027 = vst [vmem:[%s3682_s22 + $0x28] sm:$0xff] %v2011_v25  ;;  %3383 = vrcp.f32 %v1950_v54  ;;  %v1951_v24 = vadd.f32 1.0, %v3380_v34  ;;  %v2050_v42 = vmul.f32 %v4108_v45, %v4166_v0  ;;  %v2854_v48 = vmul.f32 -1.442695, %v4183_v55 }
 0x397   : > { %3385 = vrcp.f32 %v1953_v63  ;;  %v2852_v4 = vmul.f32 -1.442695, %v4190_v17  ;;  %v2052_v51 = vmul.f32 %v4108_v45, %v4161_v12 }
 0x398   : > { %3387 = vrcp.f32 %v1951_v24  ;;  %2071 = vadd.xlane.f32.xlu0 %v2050_v42  ;;  %2073 = vadd.xlane.f32.xlu1 %v2051_v27 }
 0x399   : > { %3389 = vpow2.f32 %v2853_v14 }
 0x39a   : > { %3391 = vpow2.f32 %v2851_v60 }
 0x39b   : > { %3393 = vpow2.f32 %v2854_v48 }
 0x39c   : > { %3395 = vpow2.f32 %v2852_v4  ;;  %2075 = vadd.xlane.f32.xlu0 %v2052_v51 }
 0x39f   : > { %v3382_v21 = vpop.eup %3381 }
 0x3a0   : > { %v3384_v50 = vpop.eup %3383  ;;  %v4201_v56 = vmul.f32 %v3382_v21, %v4126_v20 }
 0x3a1   : > { %v3386_v57 = vpop.eup %3385  ;;  %v4204_v46 = vmul.f32 %v3384_v50, %v4134_v49 }
 0x3a2   : > { %v3388_v18 = vpop.eup %3387  ;;  %v2016_v58 = vadd.f32 %v4201_v56, %v3919_v32  ;;  %v4209_v44 = vmul.f32 %v3386_v57, %v4141_v37 }
 0x3a3   : > { %v3390_v31 = vpop.eup %3389  ;;  %v2014_v59 = vadd.f32 %v4204_v46, %v3911_v29  ;;  %v4214_v5 = vmul.f32 %v3388_v18, %v4146_v62  ;;  %v2053_v20 = vmul.f32 %v4108_v45, %v4204_v46 }
 0x3a4   : > { %v3392_v49 = vpop.eup %3391  ;;  %2032 = vst [vmem:[%s3682_s22 + $0x50] sm:$0xff] %v2016_v58  ;;  %v2017_v32 = vadd.f32 %v4209_v44, %v3922_v33  ;;  %v1956_v43 = vadd.f32 1.0, %v3390_v31  ;;  %v2055_v33 = vmul.f32 %v4108_v45, %v4201_v56 }
 0x3a5   : > { %v3394_v37 = vpop.eup %3393  ;;  %2030 = vst [vmem:[%s3682_s22 + $0x40] sm:$0xff] %v2014_v59  ;;  %v2015_v7 = vadd.f32 %v4214_v5, %v3914_v30  ;;  %v1954_v11 = vadd.f32 1.0, %v3392_v49  ;;  %2077 = vadd.xlane.f32.xlu1 %v2053_v20  ;;  %v2054_v29 = vmul.f32 %v4108_v45, %v4214_v5  ;;  %v2056_v30 = vmul.f32 %v4108_v45, %v4209_v44 }
 0x3a6   : > { %v3396_v62 = vpop.eup %3395  ;;  %2033 = vst [vmem:[%s3682_s22 + $0x58] sm:$0xff] %v2017_v32  ;;  %3397 = vrcp.f32 %v1956_v43  ;;  %v1957_v3 = vadd.f32 1.0, %v3394_v37 }
 0x3a7   : > { %2031 = vst [vmem:[%s3682_s22 + $0x48] sm:$0xff] %v2015_v7  ;;  %3399 = vrcp.f32 %v1954_v11  ;;  %v1955_v40 = vadd.f32 1.0, %v3396_v62  ;;  %2079 = vadd.xlane.f32.xlu0 %v2054_v29 }
 0x3a8   : > { %3401 = vrcp.f32 %v1957_v3 }
 0x3a9   : > { %3403 = vrcp.f32 %v1955_v40  ;;  %2081 = vadd.xlane.f32.xlu1 %v2055_v33 }
 0x3ab   : > { %2083 = vadd.xlane.f32.xlu0 %v2056_v30 }
 0x3b0   : > { %v3398_v13 = vpop.eup %3397 }
 0x3b1   : > { %v3400_v15 = vpop.eup %3399  ;;  %v4233_v53 = vmul.f32 %v3398_v13, %v4169_v16 }
 0x3b2   : > { %v3402_v6 = vpop.eup %3401  ;;  %v4236_v26 = vmul.f32 %v3400_v15, %v4177_v22 }
 0x3b3   : > { %v3404_v8 = vpop.eup %3403  ;;  %v2020_v19 = vadd.f32 %v4233_v53, %v3935_v38  ;;  %v4241_v23 = vmul.f32 %v3402_v6, %v4183_v55 }
 0x3b4   : > { %v2018_v61 = vadd.f32 %v4236_v26, %v3927_v35  ;;  %v4246_v25 = vmul.f32 %v3404_v8, %v4190_v17  ;;  %v2057_v16 = vmul.f32 %v4108_v45, %v4236_v26  ;;  %v2059_v35 = vmul.f32 %v4108_v45, %v4233_v53 }
 0x3b5   : > { %2036 = vst [vmem:[%s3682_s22 + $0x70] sm:$0xff] %v2020_v19  ;;  %v2021_v22 = vadd.f32 %v4241_v23, %v3938_v41  ;;  %v2060_v55 = vmul.f32 %v4108_v45, %v4241_v23  ;;  %v2224_v41 = vshrl.u32 %v691_v39, 7 }
 0x3b6   : > { %2034 = vst [vmem:[%s3682_s22 + $0x60] sm:$0xff] %v2018_v61  ;;  %v2019_v38 = vadd.f32 %v4246_v25, %v3930_v36  ;;  %2085 = vadd.xlane.f32.xlu1 %v2057_v16  ;;  %v2058_v54 = vmul.f32 %v4108_v45, %v4246_v25  ;;  %v4270_v36 = vld [vmem:[%s651_s24] ss:$0 sm:$0xff]  ;;  %v3538_v45 = vmov 1.0|1.0  }
 0x3b7   : > { %2037 = vst [vmem:[%s3682_s22 + $0x78] sm:$0xff] %v2021_v22  ;;  %v2225_v2 = vadd.s32 8, %v2224_v41  ;;  %v4272_v27 = vadd.s32 16, %v2224_v41  ;;  %vm2232_vm5 = vcmp.eq.s32.totalorder %v2224_v41, %v4270_v36 }
 0x3b8   : > { %2035 = vst [vmem:[%s3682_s22 + $0x68] sm:$0xff] %v2019_v38  ;;  %2087 = vadd.xlane.f32.xlu0 %v2058_v54  ;;  %s2093_s22 = sld [smem:[#allocation3]] }
 0x3b9   : > { %vm2233_vm3 = vcmp.eq.s32.totalorder %v2225_v2, %v4270_v36  ;;  %vm2234_vm6 = vcmp.eq.s32.totalorder %v4272_v27, %v4270_v36  ;;  %v3469_v36 = vld [vmem:[%s4438_s12] sm:$0xff] (!%p2880_p6)   ;;  %v3470_v27 = vld [vmem:[%s4438_s12 + $0x8] sm:$0xff] (!%p2880_p6)  }
 0x3ba   : > { %2089 = vadd.xlane.f32.xlu1 %v2059_v35  ;;  %vm2876_vm4 = vmpackc.low %vm2233_vm3, %vm2232_vm5 }
 0x3bb   : > { %3174 = vmatprep.mubr.msk.bf16.mxu0 %vm2876_vm4, %v3538_v45  ;;  %vm2878_vm7 = vmpackc.low %vm2234_vm6, %vm2234_vm6 }
 0x3bc   : > { %2091 = vadd.xlane.f32.xlu0 %v2060_v55 }
 0x3be   : > { %v4279_v39 = vstv %s2093_s22 }
 0x410   : > { %v2062_v34 = vpop.xlane.xlu0 %2061 }
 0x411   : > { %v2095_v63 = vadd.f32 %v4279_v39, %v2062_v34 }
 0x412   : > { %v2064_v14 = vpop.xlane.xlu1 %2063 }
 0x413   : > { %v2856_v17 = vmul.f32 -1.442695, %v2095_v63  ;;  %v2096_v24 = vadd.f32 %v4279_v39, %v2064_v14 }
 0x414   : > { %v2066_v60 = vpop.xlane.xlu0 %2065 }
 0x415   : > { %3405 = vpow2.f32 %v2856_v17  ;;  %v2857_v42 = vmul.f32 -1.442695, %v2096_v24  ;;  %v2097_v48 = vadd.f32 %v4279_v39, %v2066_v60 }
 0x417   : > { %3407 = vpow2.f32 %v2857_v42  ;;  %v2858_v4 = vmul.f32 -1.442695, %v2097_v48 }
 0x418   : > { %v2068_v51 = vpop.xlane.xlu0 %2067 }
 0x419   : > { %3409 = vpow2.f32 %v2858_v4  ;;  %v2098_v21 = vadd.f32 %v4279_v39, %v2068_v51 }
 0x41b   : > { %v2859_v50 = vmul.f32 -1.442695, %v2098_v21 }
 0x41d   : > { %3411 = vpow2.f32 %v2859_v50 }
 0x41f   : > { %v3406_v57 = vpop.eup %3405 }
 0x420   : > { %v2159_v18 = vadd.f32 1.0, %v3406_v57 }
 0x421   : > { %v3408_v58 = vpop.eup %3407  ;;  %v2070_v31 = vpop.xlane.xlu1 %2069 }
 0x422   : > { %3413 = vrcp.f32 %v2159_v18  ;;  %v2160_v59 = vadd.f32 1.0, %v3408_v58  ;;  %v2099_v20 = vadd.f32 %v4279_v39, %v2070_v31 }
 0x423   : > { %v3410_v49 = vpop.eup %3409 }
 0x424   : > { %3415 = vrcp.f32 %v2160_v59  ;;  %v2860_v32 = vmul.f32 -1.442695, %v2099_v20  ;;  %v2161_v43 = vadd.f32 1.0, %v3410_v49 }
 0x425   : > { %v2072_v37 = vpop.xlane.xlu0 %2071  ;;  %v2074_v7 = vpop.xlane.xlu1 %2073 }
 0x426   : > { %v2100_v11 = vadd.f32 %v4279_v39, %v2072_v37  ;;  %v2101_v29 = vadd.f32 %v4279_v39, %v2074_v7  ;;  %3417 = vpow2.f32 %v2860_v32 }
 0x427   : > { %v3412_v62 = vpop.eup %3411  ;;  %3419 = vrcp.f32 %v2161_v43 }
 0x428   : > { %v2162_v3 = vadd.f32 1.0, %v3412_v62  ;;  %v2861_v40 = vmul.f32 -1.442695, %v2100_v11  ;;  %v2862_v33 = vmul.f32 -1.442695, %v2101_v29 }
 0x429   : > { %v2076_v30 = vpop.xlane.xlu0 %2075 }
 0x42a   : > { %3421 = vrcp.f32 %v2162_v3  ;;  %v2102_v13 = vadd.f32 %v4279_v39, %v2076_v30 }
 0x42b   : > { %3423 = vpow2.f32 %v2861_v40 }
 0x42c   : > { %v3414_v15 = vpop.eup %3413  ;;  %3425 = vpow2.f32 %v2862_v33  ;;  %v2863_v6 = vmul.f32 -1.442695, %v2102_v13 }
 0x42d   : > { %v2207_v19 = vmul.f32 %v3414_v15, %v4110_v52 }
 0x42e   : > { %v3416_v8 = vpop.eup %3415  ;;  %3427 = vpow2.f32 %v2863_v6 }
 0x42f   : > { %v2208_v61 = vmul.f32 %v3416_v8, %v4118_v28 }
 0x430   : > { %v3418_v16 = vpop.eup %3417 }
 0x431   : > { %v2246_v22 = vpack.c.bf16 %v2208_v61, %v2207_v19  ;;  %v2163_v38 = vadd.f32 1.0, %v3418_v16  ;;  %v3420_v35 = vpop.eup %3419 }
 0x432   : > { %v2078_v54 = vpop.xlane.xlu1 %2077  ;;  %v2209_v60 = vmul.f32 %v3420_v35, %v4103_v9 }
 0x433   : > { %v2103_v55 = vadd.f32 %v4279_v39, %v2078_v54  ;;  %3158 = vmatprep.subr.bf16.mxu0 %v2246_v22  ;;  %3429 = vrcp.f32 %v2163_v38 }
 0x434   : > { %v3422_v41 = vpop.eup %3421  ;;  %v2080_v2 = vpop.xlane.xlu0 %2079  ;;  %3159 = vmatpush3.bf16.msra.mxu0 %v2246_v22 }
 0x435   : > { %v3424_v34 = vpop.eup %3423  ;;  %v2864_v63 = vmul.f32 -1.442695, %v2103_v55  ;;  %v2104_v14 = vadd.f32 %v4279_v39, %v2080_v2  ;;  %v2210_v17 = vmul.f32 %v3422_v41, %v4114_v10 }
 0x436   : > { %v3426_v52 = vpop.eup %3425  ;;  %v2164_v28 = vadd.f32 1.0, %v3424_v34  ;;  %v2082_v24 = vpop.xlane.xlu1 %2081 }
 0x437   : > { %v2165_v42 = vadd.f32 1.0, %v3426_v52  ;;  %3431 = vpow2.f32 %v2864_v63  ;;  %v2865_v48 = vmul.f32 -1.442695, %v2104_v14  ;;  %v2105_v4 = vadd.f32 %v4279_v39, %v2082_v24 }
 0x438   : > { %v3428_v51 = vpop.eup %3427  ;;  %3433 = vrcp.f32 %v2164_v28  ;;  %v2084_v21 = vpop.xlane.xlu0 %2083  ;;  %v2247_v50 = vpack.c.bf16 %v2210_v17, %v2209_v60 }
 0x439   : > { %3435 = vrcp.f32 %v2165_v42  ;;  %v2166_v57 = vadd.f32 1.0, %v3428_v51  ;;  %v2866_v18 = vmul.f32 -1.442695, %v2105_v4  ;;  %v2106_v10 = vadd.f32 %v4279_v39, %v2084_v21 }
 0x43a   : > { %3437 = vpow2.f32 %v2865_v48  ;;  %3160 = vmatprep.subr.bf16.mxu0 %v2247_v50 }
 0x43b   : > { %3439 = vrcp.f32 %v2166_v57  ;;  %v2867_v58 = vmul.f32 -1.442695, %v2106_v10  ;;  %3161 = vmatpush3.bf16.msra.mxu0 %v2247_v50 }
 0x43c   : > { %3441 = vpow2.f32 %v2866_v18 }
 0x43d   : > { %3443 = vpow2.f32 %v2867_v58  ;;  %v3430_v9 = vpop.eup %3429 }
 0x43e   : > { %v2211_v43 = vmul.f32 %v3430_v9, %v4156_v47 }
 0x441   : > { %v3432_v31 = vpop.eup %3431 }
 0x442   : > { %v3434_v59 = vpop.eup %3433  ;;  %v2167_v20 = vadd.f32 1.0, %v3432_v31 }
 0x443   : > { %v3436_v49 = vpop.eup %3435  ;;  %v2086_v32 = vpop.xlane.xlu1 %2085  ;;  %v2212_v37 = vmul.f32 %v3434_v59, %v4166_v0 }
 0x444   : > { %v3438_v7 = vpop.eup %3437  ;;  %v2107_v11 = vadd.f32 %v4279_v39, %v2086_v32  ;;  %3445 = vrcp.f32 %v2167_v20  ;;  %v2213_v0 = vmul.f32 %v3436_v49, %v4153_v1 }
 0x445   : > { %v3440_v29 = vpop.eup %3439  ;;  %v2168_v62 = vadd.f32 1.0, %v3438_v7  ;;  %v2088_v3 = vpop.xlane.xlu0 %2087  ;;  %v2248_v40 = vpack.c.bf16 %v2212_v37, %v2211_v43  ;;  %v3472_v37 = vld [vmem:[%s4438_s12 + $0x18] sm:$0xff] (!%p2880_p6)   ;;  %v4334_v7 = vld [vmem:[%s4463_s19] sm:$0xff] (!%p2880_p6) }
 0x446   : > { %v3442_v33 = vpop.eup %3441  ;;  %v2868_v30 = vmul.f32 -1.442695, %v2107_v11  ;;  %v2108_v13 = vadd.f32 %v4279_v39, %v2088_v3  ;;  %v2214_v15 = vmul.f32 %v3440_v29, %v4161_v12  ;;  %v4339_v11 = vld [vmem:[%s4463_s19 + $0x8] sm:$0xff] (!%p2880_p6) }
 0x447   : > { %v3444_v6 = vpop.eup %3443  ;;  %3447 = vrcp.f32 %v2168_v62  ;;  %v2169_v8 = vadd.f32 1.0, %v3442_v33  ;;  %3162 = vmatprep.subr.bf16.mxu0 %v2248_v40  ;;  %v2090_v47 = vpop.xlane.xlu1 %2089 }
 0x448   : > { %v2170_v19 = vadd.f32 1.0, %v3444_v6  ;;  %3449 = vpow2.f32 %v2868_v30  ;;  %v2869_v61 = vmul.f32 -1.442695, %v2108_v13  ;;  %3163 = vmatpush3.bf16.msra.mxu0 %v2248_v40  ;;  %v2109_v16 = vadd.f32 %v4279_v39, %v2090_v47  ;;  %v3473_v40 = vld [vmem:[%s4438_s12 + $0x20] sm:$0xff] (!%p2880_p6)   ;;  %v3474_v13 = vld [vmem:[%s4438_s12 + $0x28] sm:$0xff] (!%p2880_p6)   ;;  %v4355_v6 = vld [vmem:[%s4463_s19 + $0x10] sm:$0xff] (!%p2880_p6) }
 0x449   : > { %3451 = vrcp.f32 %v2169_v8  ;;  %v2092_v22 = vpop.xlane.xlu0 %2091  ;;  %v2249_v38 = vpack.c.bf16 %v2214_v15, %v2213_v0  ;;  %v3475_v15 = vld [vmem:[%s4438_s12 + $0x30] sm:$0xff] (!%p2880_p6)   ;;  %v3476_v47 = vld [vmem:[%s4438_s12 + $0x38] sm:$0xff] (!%p2880_p6)  }
 0x44a   : > { %3453 = vrcp.f32 %v2170_v19  ;;  %v2870_v54 = vmul.f32 -1.442695, %v2109_v16  ;;  %v2110_v12 = vadd.f32 %v4279_v39, %v2092_v22  ;;  %v3478_v16 = vld [vmem:[%s4440_s14 + $0x8] sm:$0xff] (!%p2880_p6)   ;;  %v3479_v22 = vld [vmem:[%s4440_s14 + $0x10] sm:$0xff] (!%p2880_p6)  }
 0x44b   : > { %3455 = vpow2.f32 %v2869_v61  ;;  %3164 = vmatprep.subr.bf16.mxu0 %v2249_v38  ;;  %v3477_v61 = vld [vmem:[%s4440_s14] sm:$0xff] (!%p2880_p6)  }
 0x44c   : > { %3457 = vpow2.f32 %v2870_v54  ;;  %v2871_v35 = vmul.f32 -1.442695, %v2110_v12  ;;  %3165 = vmatpush3.bf16.msra.mxu0 %v2249_v38  ;;  %3198 = vmatprep.subr.bf16.mxu1 (!%p2880_p6), %v3477_v61  ;;  %v3480_v38 = vld [vmem:[%s4440_s14 + $0x18] sm:$0xff] (!%p2880_p6)   ;;  %v3481_v54 = vld [vmem:[%s4440_s14 + $0x20] sm:$0xff] (!%p2880_p6)   ;;  %v3482_v12 = vld [vmem:[%s4440_s14 + $0x28] sm:$0xff] (!%p2880_p6)  }
 0x44d   : > { %3199 = vmatpush3.bf16.msra.mxu1 (!%p2880_p6), %v3477_v61 }
 0x44e   : > { %3459 = vpow2.f32 %v2871_v35  ;;  %v3446_v1 = vpop.eup %3445  ;;  %3200 = vmatprep.subr.bf16.mxu1 (!%p2880_p6), %v3478_v16  ;;  %v3483_v35 = vld [vmem:[%s4440_s14 + $0x30] sm:$0xff] (!%p2880_p6)  }
 0x44f   : > { %v2215_v2 = vmul.f32 %v3446_v1, %v4204_v46  ;;  %v3484_v1 = vld [vmem:[%s4440_s14 + $0x38] sm:$0xff] (!%p2880_p6)  }
 0x451   : > { %v3448_v55 = vpop.eup %3447  ;;  %3201 = vmatpush3.bf16.msra.mxu1 (!%p2880_p6), %v3478_v16 }
 0x452   : > { %v3450_v41 = vpop.eup %3449  ;;  %v2216_v34 = vmul.f32 %v3448_v55, %v4214_v5  ;;  %3202 = vmatprep.subr.bf16.mxu1 (!%p2880_p6), %v3479_v22  ;;  %v2881_v55 = vld [vmem:[%s4464_s27] ss:$0 sm:$0xff] (!%p2880_p6) }
 0x453   : > { %v3452_v63 = vpop.eup %3451  ;;  %v2171_v14 = vadd.f32 1.0, %v3450_v41 }
 0x454   : > { %v3454_v17 = vpop.eup %3453  ;;  %v2250_v52 = vpack.c.bf16 %v2216_v34, %v2215_v2  ;;  %v2217_v39 = vmul.f32 %v3452_v63, %v4201_v56 }
 0x455   : > { %v3456_v28 = vpop.eup %3455  ;;  %v2218_v24 = vmul.f32 %v3454_v17, %v4209_v44  ;;  %3461 = vrcp.f32 %v2171_v14  ;;  %3203 = vmatpush3.bf16.msra.mxu1 (!%p2880_p6), %v3479_v22 }
 0x456   : > { %v3458_v60 = vpop.eup %3457  ;;  %v2172_v42 = vadd.f32 1.0, %v3456_v28  ;;  %3166 = vmatprep.subr.bf16.mxu0 %v2250_v52  ;;  %3204 = vmatprep.subr.bf16.mxu1 (!%p2880_p6), %v3480_v38 }
 0x457   : > { %v2173_v48 = vadd.f32 1.0, %v3458_v60  ;;  %3167 = vmatpush3.bf16.msra.mxu0 %v2250_v52  ;;  %v2251_v4 = vpack.c.bf16 %v2218_v24, %v2217_v39 }
 0x458   : > { %v3460_v51 = vpop.eup %3459  ;;  %3463 = vrcp.f32 %v2172_v42 }
 0x459   : > { %3465 = vrcp.f32 %v2173_v48  ;;  %v2174_v46 = vadd.f32 1.0, %v3460_v51  ;;  %3168 = vmatprep.subr.bf16.mxu0 %v2251_v4  ;;  %3205 = vmatpush3.bf16.msra.mxu1 (!%p2880_p6), %v3480_v38 }
 0x45a   : > { %3206 = vmatprep.subr.bf16.mxu1 (!%p2880_p6), %v3481_v54 }
 0x45b   : > { %3467 = vrcp.f32 %v2174_v46  ;;  %3169 = vmatpush3.bf16.msra.mxu0 %v2251_v4 }
 0x45d   : > { %3207 = vmatpush3.bf16.msra.mxu1 (!%p2880_p6), %v3481_v54 }
 0x45e   : > { %3208 = vmatprep.subr.bf16.mxu1 (!%p2880_p6), %v3482_v12 }
 0x45f   : > { %v3462_v5 = vpop.eup %3461 }
 0x460   : > { %v2219_v56 = vmul.f32 %v3462_v5, %v4236_v26  ;;  %v2245_v26 = vld [vmem:[#allocation2 + $0x10] sm:$0xff] }
 0x461   : > { %3209 = vmatpush3.bf16.msra.mxu1 (!%p2880_p6), %v3482_v12 }
 0x462   : > { %v3464_v21 = vpop.eup %3463  ;;  %3210 = vmatprep.subr.bf16.mxu1 (!%p2880_p6), %v3483_v35 }
 0x463   : > { %v3466_v50 = vpop.eup %3465  ;;  %v2220_v44 = vmul.f32 %v3464_v21, %v4246_v25  ;;  %v2243_v25 = vld [vmem:[#allocation2] sm:$0xff] }
 0x464   : > { %v2221_v10 = vmul.f32 %v3466_v50, %v4233_v53  ;;  %v2244_v53 = vld [vmem:[#allocation2 + $0x8] sm:$0xff]  ;;  %v2893_v21 = vld [vmem:[%s4465_s0] ss:$0 sm:$0xff] (!%p2880_p6) }
 0x465   : > { %v3468_v57 = vpop.eup %3467  ;;  %v2252_v18 = vpack.c.bf16 %v2220_v44, %v2219_v56  ;;  %3211 = vmatpush3.bf16.msra.mxu1 (!%p2880_p6), %v3483_v35 }
 0x466   : > { %v2222_v58 = vmul.f32 %v3468_v57, %v4241_v23  ;;  %3212 = vmatprep.subr.bf16.mxu1 (!%p2880_p6), %v3484_v1 }
 0x467   : > { %3170 = vmatprep.subr.bf16.mxu0 %v2252_v18 }
 0x468   : > { %3171 = vmatpush3.bf16.msra.mxu0 %v2252_v18  ;;  %v2253_v9 = vpack.c.bf16 %v2222_v58, %v2221_v10 }
 0x469   : > { %3213 = vmatpush3.bf16.msra.mxu1 (!%p2880_p6), %v3484_v1 }
 0x46a   : > { %3172 = vmatprep.subr.bf16.mxu0 %v2253_v9 }
 0x46c   : > { %3173 = vmatpush3.bf16.msra.mxu0 %v2253_v9  ;;  %v2894_v9 = vld [vmem:[%s4466_s15] ss:$0 sm:$0xff] (!%p2880_p6) }
 0x46d   : > { %3178 = vmatprep.subr.bf16.mxu0 (!%p2880_p6), %v3469_v36 }
 0x46f   : > { %3175 = vmatmul.mubr.msk.bf16.vlgmr.msra.gmra.mrb[48].mxu0 %vm2878_vm7, %v3538_v45  ;;  %v3471_v45 = vld [vmem:[%s4438_s12 + $0x10] sm:$0xff] (!%p2880_p6)  }
 0x470   : > { %3179 = vmatpush3.bf16.msra.mxu0 (!%p2880_p6), %v3469_v36 }
 0x471   : > { %3180 = vmatprep.subr.bf16.mxu0 (!%p2880_p6), %v3470_v27 }
 0x474   : > { %3181 = vmatpush3.bf16.msra.mxu0 (!%p2880_p6), %v3470_v27 }
 0x475   : > { %3182 = vmatprep.subr.bf16.mxu0 (!%p2880_p6), %v3471_v45 }
 0x478   : > { %3183 = vmatpush3.bf16.msra.mxu0 (!%p2880_p6), %v3471_v45 }
 0x479   : > { %3184 = vmatprep.subr.bf16.mxu0 (!%p2880_p6), %v3472_v37 }
 0x47c   : > { %3185 = vmatpush3.bf16.msra.mxu0 (!%p2880_p6), %v3472_v37 }
 0x47d   : > { %3186 = vmatprep.subr.bf16.mxu0 (!%p2880_p6), %v3473_v40 }
 0x480   : > { %3187 = vmatpush3.bf16.msra.mxu0 (!%p2880_p6), %v3473_v40 }
 0x481   : > { %3188 = vmatprep.subr.bf16.mxu0 (!%p2880_p6), %v3474_v13 }
 0x484   : > { %3189 = vmatpush3.bf16.msra.mxu0 (!%p2880_p6), %v3474_v13 }
 0x485   : > { %3190 = vmatprep.subr.bf16.mxu0 (!%p2880_p6), %v3475_v15 }
 0x488   : > { %3191 = vmatpush3.bf16.msra.mxu0 (!%p2880_p6), %v3475_v15 }
 0x489   : > { %3192 = vmatprep.subr.bf16.mxu0 (!%p2880_p6), %v3476_v47 }
 0x48c   : > { %3193 = vmatpush3.bf16.msra.mxu0 (!%p2880_p6), %v3476_v47 }
 0x542   : > { %v3176_v31 = vpop.f32.mrb[48].mxu0  ;;  %2311 = sbr.rel (%p2880_p6) target bundleno = 1837 (0x72d), region = 100 }
 0x543   : > { %v2304_v59 = vadd.f32 %v3176_v31, %v2245_v26  ;;  %v2288_v20 = vpop.f32.mrb[49].mxu0 }
 0x544   : > { %v2302_v49 = vadd.f32 %v2288_v20, %v2243_v25  ;;  %v3177_v23 = vpop.f32.mrb[50].mxu0 }
 0x545   : > { %2307 = vst [vmem:[#allocation2 + $0x10] sm:$0xff] %v2304_v59  ;;  %v2291_v32 = vpop.f32.mrb[51].mxu0 }
 0x546   : > { %2305 = vst [vmem:[#allocation2] sm:$0xff] %v2302_v49  ;;  %v2303_v43 = vadd.f32 %v2291_v32, %v2244_v53  ;;  %v2895_v49 = vld [vmem:[%s4467_s11] ss:$0 sm:$0xff] (!%p2880_p6) }
 0x548   : > { %2306 = vst [vmem:[#allocation2 + $0x8] sm:$0xff] %v2303_v43 }
 0x54c   : > { %v2317_v8 = vld [vmem:[#allocation2 + $0x10] sm:$0xff] }
 0x54d   : > { %v2315_v29 = vld [vmem:[#allocation2] sm:$0xff]  ;;  %v2320_v0 = vadd.f32 %v2317_v8, %v4355_v6 }
 0x54e   : > { %v2318_v3 = vadd.f32 %v2315_v29, %v4334_v7 }
 0x54f   : > { %v2316_v62 = vld [vmem:[#allocation2 + $0x8] sm:$0xff]  ;;  %v2322_v19 = vpack.c.bf16 %v2320_v0, %v2320_v0 }
 0x550   : > { %v2319_v33 = vadd.f32 %v2316_v62, %v4339_v11 }
 0x552   : > { %v2321_v30 = vpack.c.bf16 %v2319_v33, %v2318_v3 }
 0x554   : > { %3194 = vmatprep.mubr.bf16.mxu0 %v2321_v30 }
 0x555   : > { %3195 = vmatmul.mubr.bf16.vlgmr.msra.gmra.mrb[0].mxu0 %v2322_v19 }
 0x628   : > { %v3196_v41 = vpop.f32.mrb[0].mxu0 }
 0x629   : > { %v2437_v2 = vadd.f32 %v3196_v41, %v2881_v55  ;;  %v2428_v34 = vpop.f32.mrb[1].mxu0 }
 0x62a   : > { %v2429_v63 = vadd.f32 %v2881_v55, %v2428_v34  ;;  %v3197_v14 = vpop.f32.mrb[2].mxu0 }
 0x62b   : > { %v2892_v17 = vmul.f32 -1.442695, %v2437_v2  ;;  %v2431_v52 = vpop.f32.mrb[3].mxu0 }
 0x62c   : > { %v2890_v28 = vmul.f32 -1.442695, %v2429_v63  ;;  %v2432_v39 = vadd.f32 %v2881_v55, %v2431_v52 }
 0x62d   : > { %3485 = vpow2.f32 %v2892_v17 }
 0x62e   : > { %3487 = vpow2.f32 %v2890_v28  ;;  %v2891_v24 = vmul.f32 -1.442695, %v2432_v39 }
 0x630   : > { %3489 = vpow2.f32 %v2891_v24 }
 0x637   : > { %v3486_v60 = vpop.eup %3485 }
 0x638   : > { %v3488_v42 = vpop.eup %3487  ;;  %v2453_v48 = vadd.f32 1.0, %v3486_v60 }
 0x639   : > { %v2451_v4 = vadd.f32 1.0, %v3488_v42 }
 0x63a   : > { %v3490_v51 = vpop.eup %3489  ;;  %3491 = vrcp.f32 %v2453_v48 }
 0x63b   : > { %3493 = vrcp.f32 %v2451_v4  ;;  %v2452_v46 = vadd.f32 1.0, %v3490_v51 }
 0x63d   : > { %3495 = vrcp.f32 %v2452_v46 }
 0x644   : > { %v3492_v5 = vpop.eup %3491 }
 0x645   : > { %v3494_v50 = vpop.eup %3493  ;;  %v2462_v56 = vmul.f32 %v3492_v5, %v2437_v2 }
 0x646   : > { %v2460_v44 = vmul.f32 %v3494_v50, %v2429_v63 }
 0x647   : > { %v3496_v57 = vpop.eup %3495  ;;  %v2472_v18 = vmul.f32 %v2893_v21, %v2462_v56 }
 0x648   : > { %v2461_v10 = vmul.f32 %v3496_v57, %v2432_v39  ;;  %v2470_v58 = vmul.f32 %v2893_v21, %v2460_v44 }
 0x649   : > { %v2482_v25 = vadd.f32 %v2894_v9, %v2472_v18 }
 0x64a   : > { %v2471_v26 = vmul.f32 %v2893_v21, %v2461_v10  ;;  %v2480_v31 = vadd.f32 %v2894_v9, %v2470_v58 }
 0x64b   : > { %v2484_v53 = vpack.c.bf16 %v2482_v25, %v2482_v25 }
 0x64c   : > { %v2481_v59 = vadd.f32 %v2894_v9, %v2471_v26 }
 0x64e   : > { %v2483_v20 = vpack.c.bf16 %v2481_v59, %v2480_v31 }
 0x650   : > { %3214 = vmatprep.mubr.bf16.mxu1 %v2483_v20 }
 0x651   : > { %3215 = vmatmul.mubr.bf16.vlgmr.msra.gmra.mrb[0].mxu1 %v2484_v53 }
 0x724   : > { %v3216_v23 = vpop.f32.mrb[0].mxu1 }
 0x725   : > { %v2599_v32 = vadd.f32 %v3216_v23, %v2895_v49  ;;  %v2590_v43 = vpop.f32.mrb[1].mxu1 }
 0x726   : > { %v2591_v36 = vadd.f32 %v2895_v49, %v2590_v43  ;;  %v3217_v27 = vpop.f32.mrb[2].mxu1 }
 0x727   : > { %v2606_v45 = vadd.f32 %v2599_v32, %v4355_v6  ;;  %v2593_v37 = vpop.f32.mrb[3].mxu1 }
 0x728   : > { %v2604_v29 = vadd.f32 %v2591_v36, %v4334_v7  ;;  %v2594_v62 = vadd.f32 %v2895_v49, %v2593_v37 }
 0x729   : > { %2609 = vst [vmem:[#allocation4 + $0x10] sm:$0xff] %v2606_v45 }
 0x72a   : > { %2607 = vst [vmem:[#allocation4] sm:$0xff] %v2604_v29  ;;  %v2605_v3 = vadd.f32 %v2594_v62, %v4339_v11 }
 0x72c   : > { %2608 = vst [vmem:[#allocation4 + $0x8] sm:$0xff] %v2605_v3 }
 0x72d PF: > { %p3224_p7 = scmp.eq.s32.totalorder %s3651_s21, 1  ;;  %s3539_s2 = smov [#allocation4]  }
 0x72e   : > { %s2625_s23 = sshll.u32 %s3539_s2, 4  ;;  %s2626_s23 = int_to_ptr.vmem [resolvable:$true] %s2625_s23 }
 0x72f   : > { %s3497_s25 = scalar_lea.vmem %s2626_s23, 384  ;;  %p3504_p11 = scmp.lt.s32.totalorder %s2626_s23, %s2626_s23 }
 0x730   : > { %p3498_p8 = scmp.ne.s32.totalorder %s2626_s23, %s3497_s25  ;;  %p3505_p12 = scmp.lt.s32.totalorder %s3497_s25, %s3497_s25 }
 0x732   : > { %p3499_p9 = pnand %p3498_p8, %p3224_p7  ;;  %p3506_p13 = por %p3505_p12, %p3504_p11 }
 0x734   : > { %p3500_p10 = pneg %p3499_p9 }
 0x736   : > { %p3507_p0 = pnand %p3506_p13, %p3500_p10 }
 0x738   : > { %3510 = shalt.err (!%p3507_p0)
}
 0x739   : > { %s4468_s26 = sld [smem:[#allocation16_spill]] }
 0x73f   : > { %s3511_s22 = scalar_lea.hbm %s4468_s26, 384 }
 0x740   : > { %p3512_p1 = scmp.ne.s32.totalorder %s4468_s26, %s3511_s22  ;;  %p3517_p4 = scmp.lt.u32.totalorder %s3511_s22, %s4468_s26 }
 0x742   : > { %p3513_p2 = pnand %p3512_p1, %p3224_p7 }
 0x744   : > { %p3514_p3 = pneg %p3513_p2 }
 0x746   : > { %p3519_p5 = pnand %p3517_p4, %p3514_p3 }
 0x748   : > { %3522 = shalt.err (!%p3519_p5)
}
 0x749   : > { %s3540_s29 = smov 128   ;;  %s3541_s0 = smov 8  }
 0x74a   : > { %3221 = dma.vmem_to_hbm [thread:$0]  (%p3224_p7), %s2626_s23, 384, %s4468_s26, [#allocation5], %s3540_s29, %s3540_s29, %s3541_s0  }
 0x74b   : > { %3528 = dma.done.wait (%p3224_p7), [#allocation5], 384  }
 0x74c   : > { %3530 = vsyncadd (%p3224_p7), [#allocation5], 4294966912 }
 0x74d PF: > { %s4469_s15 = sld [smem:[#allocation7_spill]] }
 0x753   : > { %s32_s20 = sadd.s32 1, %s4469_s15  }
 0x754   : > { %p29_p6 = scmp.ge.s32.totalorder %s32_s20, 4  }
 0x756   :  { %31 = sbr.rel (!%p29_p6) target bundleno = 12 (0xc), region = 148 }
 0x75d   :  { %2649 = vsyncpa [#allocation5], 1 }
 0x75e   :  { %2651 = vsyncpa [#allocation5 + $0x1], 1 }

</bundles_post_ra>
